<compile_context>
chip_gen: v5e
topology: v5e:2x2
jax: 0.10.0
libtpu: 0.0.40
codegen_flags: <defaults>
</compile_context>

<pallas_src>
import functools

import jax
import jax.numpy as jnp
from jax.experimental import pallas as pl
from jax.experimental.pallas import tpu as pltpu

NHEAD = 2
LN_EPS = 1e-5


def _layer_norm(v, g, b):
    mu = jnp.mean(v, axis=-1, keepdims=True)
    var = jnp.mean((v - mu) ** 2, axis=-1, keepdims=True)
    return (v - mu) * jax.lax.rsqrt(var + LN_EPS) * g + b


def joinnet_kernel(x_ref, valid_ref, wqkv_ref, wo_ref, w1_ref, w2_ref,
                   pvec_ref, o_ref, *, seq_len):
    R = x_ref.shape[1]             # rows per grid step = b_tile * seq_len
    H = x_ref.shape[2]
    F = w1_ref.shape[1]
    S = seq_len
    bt = R // S                    # sequences folded into this grid step
    dh = H // NHEAD
    scale = 1.0 / (dh ** 0.5)

    # Packed small parameters: one (10, W) f32 array, static lane slices.
    pv = pvec_ref[...]
    ln0_g, ln0_b = pv[0:1, :H], pv[1:2, :H]
    b_qkv = pv[2:3, :3 * H]
    b_o = pv[3:4, :H]
    ln1_g, ln1_b = pv[4:5, :H], pv[5:6, :H]
    b_1 = pv[6:7, :F]
    b_2 = pv[7:8, :H]
    ln2_g, ln2_b = pv[8:9, :H], pv[9:10, :H]

    x = x_ref[0]                   # (R, H) f32, whole sub-batch folded in rows

    # JoinNet.norm1 on the stacked inputs (f32 math).
    x = _layer_norm(x, ln0_g, ln0_b)

    # Fused Q/K/V projection: one bf16 MXU pass, f32 accumulate, one bias add.
    qkv = jnp.dot(x.astype(jnp.bfloat16), wqkv_ref[...],
                  preferred_element_type=jnp.float32) + b_qkv    # (R, 3H) f32

    # Per-sequence view (pure leading-dim split; S is a multiple of 8).
    qkv = qkv.reshape(bt, S, 3 * H)

    # Causal + key-padding mask, per sequence: boolean (bt, S, S).
    qi = jax.lax.broadcasted_iota(jnp.int32, (S, S), 0)
    ki = jax.lax.broadcasted_iota(jnp.int32, (S, S), 1)
    causal = ki <= qi                                            # (S, S)
    key_ok = valid_ref[0] > 0.5                                  # (bt, S)
    allowed = jnp.logical_and(causal[None, :, :], key_ok[:, None, :])

    # Multi-head attention (NHEAD=2, static unroll).  Scores are per-sequence
    # (bt, S, S): no cross-sequence work, no (R, R) temporaries.
    wo = wo_ref[...]                                             # (H, H) bf16
    attn = b_o                                                   # (1, H) f32
    for h in range(NHEAD):
        lo = h * dh
        qh = (qkv[:, :, lo:lo + dh] * scale).astype(jnp.bfloat16)
        kh = qkv[:, :, H + lo:H + lo + dh].astype(jnp.bfloat16)
        vh = qkv[:, :, 2 * H + lo:2 * H + lo + dh].astype(jnp.bfloat16)

        s = jnp.einsum('bqd,bkd->bqk', qh, kh,
                       preferred_element_type=jnp.float32)       # (bt, S, S)
        s = jnp.where(allowed, s, -1e30)                         # no f32 bias buf
        m = jnp.max(s, axis=-1, keepdims=True)
        p = jnp.exp(s - m)
        p = p * pl.reciprocal(jnp.sum(p, axis=-1, keepdims=True), approx=True)

        oh = jnp.einsum('bqk,bkd->bqd', p.astype(jnp.bfloat16), vh,
                        preferred_element_type=jnp.float32)      # (bt, S, dh)
        # Output projection without a head concat: sum of sublane-sliced dots
        # (offsets are multiples of 16, the bf16 sublane tile).
        attn = attn + jnp.dot(oh.reshape(R, dh).astype(jnp.bfloat16),
                              wo[lo:lo + dh, :],
                              preferred_element_type=jnp.float32)

    # Residual + post-norm (encoder layer norm1), f32 math.
    x = _layer_norm(x + attn, ln1_g, ln1_b)

    # Feed-forward (ReLU), bf16 matmuls with f32 accumulation.
    h1 = jnp.maximum(
        jnp.dot(x.astype(jnp.bfloat16), w1_ref[...],
                preferred_element_type=jnp.float32) + b_1, 0.0)
    ff = jnp.dot(h1.astype(jnp.bfloat16), w2_ref[...],
                 preferred_element_type=jnp.float32) + b_2

    # Residual + post-norm (encoder layer norm2).
    x = _layer_norm(x + ff, ln2_g, ln2_b)

    o_ref[0] = x.astype(o_ref.dtype)


def _pack_params(params):
    """Fuse wq|wk|wv into one bf16 matrix and pack all small vectors into a
    single lane-dense (10, W) f32 array (one DMA stream instead of 14)."""
    H = params["wq"].shape[0]
    F = params["w1"].shape[1]
    W = max(3 * H, F, 128)

    w_qkv = jnp.concatenate([params["wq"], params["wk"], params["wv"]], axis=1)
    b_qkv = jnp.concatenate([params["bq"], params["bk"], params["bv"]], axis=1)

    def row(v):
        v = v.reshape(1, -1).astype(jnp.float32)
        return jnp.pad(v, ((0, 0), (0, W - v.shape[1])))

    pvec = jnp.concatenate([
        row(params["ln0_g"]), row(params["ln0_b"]),
        row(b_qkv), row(params["bo"]),
        row(params["ln1_g"]), row(params["ln1_b"]),
        row(params["b1"]), row(params["b2"]),
        row(params["ln2_g"]), row(params["ln2_b"]),
    ], axis=0)                                                   # (10, W) f32

    return (w_qkv.astype(jnp.bfloat16), params["wo"].astype(jnp.bfloat16),
            params["w1"].astype(jnp.bfloat16), params["w2"].astype(jnp.bfloat16),
            pvec)


def _vmem_capacity_bytes():
    try:
        cap = getattr(pltpu.get_tpu_info(), "vmem_capacity_bytes", None)
        if cap:
            return int(cap)
    except Exception:
        pass
    return 64 << 20                      # conservative fallback (v7x physical)


def _num_tensorcores_per_chip():
    try:
        kind = jax.devices()[0].device_kind.lower()
    except Exception:
        return 1
    # v7x and the megacore chips (v4 / v5p) have 2 TensorCores per chip.
    return 2 if ("v7" in kind or "v4" in kind or "v5p" in kind) else 1


def _vmem_estimate_bytes(b_tile, S, H, F):
    """Rough peak VMEM for one grid step: double-buffered in/out blocks,
    weights, and the dominant activation / attention temporaries."""
    R = b_tile * S
    f32, bf16 = 4, 2
    blocks = 2 * 2 * R * H * f32                        # in + out, double-buf
    acts = R * (3 * H + F + 6 * H) * f32                # qkv, ffn hidden, temps
    attn = b_tile * S * S * f32 * 4                     # scores/probs/mask slack
    weights = 2 * bf16 * (3 * H * H + H * H + 2 * H * F)
    small = 2 * 10 * max(3 * H, F, 128) * f32
    return blocks + acts + attn + weights + small


def _choose_b_tile(B, S, H, F, vmem_cap):
    cores = _num_tensorcores_per_chip()
    b_tile = B // cores if (cores > 1 and B % cores == 0) else B
    budget = min(48 << 20, int(vmem_cap * 0.6))         # headroom on v7x / v5e
    for d in sorted((d for d in range(1, b_tile + 1) if B % d == 0),
                    reverse=True):
        if _vmem_estimate_bytes(d, S, H, F) <= budget:
            return d
    return 1


def encoder_pallas(stacked, valid, params, b_tile=None):
    """stacked: (B, S, H) f32, valid: (B, S) f32 (1 = valid token)."""
    B, S, H = stacked.shape
    assert H % NHEAD == 0 and S % 8 == 0
    dh = H // NHEAD

    w_qkv, w_o, w_1, w_2, pvec = _pack_params(params)
    F = w_1.shape[1]
    W = pvec.shape[1]

    vmem_cap = _vmem_capacity_bytes()
    if b_tile is None:
        b_tile = _choose_b_tile(B, S, H, F, vmem_cap)
    assert B % b_tile == 0
    n_tiles = B // b_tile
    R = b_tile * S

    # Fold b_tile sequences into the row axis (pure metadata reshapes).
    x_t = stacked.astype(jnp.float32).reshape(n_tiles, R, H)
    valid_t = valid.astype(jnp.float32).reshape(n_tiles, b_tile, S)

    kernel = functools.partial(joinnet_kernel, seq_len=S)

    in_specs = [
        pl.BlockSpec((1, R, H), lambda b: (b, 0, 0)),            # folded inputs
        pl.BlockSpec((1, b_tile, S), lambda b: (b, 0, 0)),       # pad mask
        pl.BlockSpec((H, 3 * H), lambda b: (0, 0)),              # fused Wqkv
        pl.BlockSpec((H, H), lambda b: (0, 0)),                  # Wo
        pl.BlockSpec((H, F), lambda b: (0, 0)),                  # W1
        pl.BlockSpec((F, H), lambda b: (0, 0)),                  # W2
        pl.BlockSpec((pvec.shape[0], W), lambda b: (0, 0)),      # packed vectors
    ]

    rows = B * S
    cost = pl.CostEstimate(
        flops=int(2 * rows * H * 3 * H                 # QKV
                  + 2 * B * NHEAD * S * S * dh * 2     # scores + PV
                  + 2 * rows * H * H                   # Wo
                  + 2 * rows * H * F * 2),             # FFN
        transcendentals=int(B * NHEAD * S * S),
        bytes_accessed=int(4 * (2 * rows * H + B * S)
                           + 2 * (3 * H * H + H * H + 2 * H * F)
                           + 4 * int(pvec.size)),
    )

    vmem_limit = int(min(vmem_cap * 3 // 4,
                         max(32 << 20,
                             2 * _vmem_estimate_bytes(b_tile, S, H, F))))

    out = pl.pallas_call(
        kernel,
        out_shape=jax.ShapeDtypeStruct((n_tiles, R, H), jnp.float32),
        grid_spec=pltpu.PrefetchScalarGridSpec(
            num_scalar_prefetch=0,
            grid=(n_tiles,),
            in_specs=in_specs,
            out_specs=pl.BlockSpec((1, R, H), lambda b: (b, 0, 0)),
        ),
        compiler_params=pltpu.CompilerParams(
            dimension_semantics=("parallel",),
            vmem_limit_bytes=vmem_limit),
        cost_estimate=cost,
    )(x_t, valid_t, w_qkv, w_o, w_1, w_2, pvec)

    return out.reshape(B, S, H)


def join_net_forward(states, actions, pad_valid, params, b_tile=None):
    """Equivalent of JoinNet.forward (inference).

    states, actions: (B, T, H); pad_valid: (B, T) with 1.0 = valid token.
    Returns (B, T, H): encoder outputs at the state positions.
    """
    B, T, H = states.shape
    S = 2 * T
    # stack + interleave: (s_0, a_0, s_1, a_1, ...)
    stacked = jnp.stack([states, actions], axis=1)               # (B, 2, T, H)
    stacked = jnp.transpose(stacked, (0, 2, 1, 3)).reshape(B, S, H)
    valid = jnp.stack([pad_valid, pad_valid], axis=1)            # (B, 2, T)
    valid = jnp.transpose(valid, (0, 2, 1)).reshape(B, S)

    x = encoder_pallas(stacked.astype(jnp.float32), valid, params,
                       b_tile=b_tile)

    x = x.reshape(B, T, 2, H).transpose(0, 2, 1, 3)              # (B, 2, T, H)
    return x[:, 0]                                               # state positions


def init_params(key, hidden_size, dim_ff):
    """Deterministic synthetic params: xavier-normal matrices, zero biases,
    unit/zero LayerNorm affine (mirrors JoinNet._init_params)."""
    H, F = hidden_size, dim_ff

    def xavier(k, shape):
        fan_in, fan_out = shape[0], shape[1]
        std = (2.0 / (fan_in + fan_out)) ** 0.5
        return std * jax.random.normal(k, shape, jnp.float32)

    ks = jax.random.split(key, 6)
    return {
        "ln0_g": jnp.ones((1, H), jnp.float32),
        "ln0_b": jnp.zeros((1, H), jnp.float32),
        "wq": xavier(ks[0], (H, H)), "bq": jnp.zeros((1, H), jnp.float32),
        "wk": xavier(ks[1], (H, H)), "bk": jnp.zeros((1, H), jnp.float32),
        "wv": xavier(ks[2], (H, H)), "bv": jnp.zeros((1, H), jnp.float32),
        "wo": xavier(ks[3], (H, H)), "bo": jnp.zeros((1, H), jnp.float32),
        "ln1_g": jnp.ones((1, H), jnp.float32),
        "ln1_b": jnp.zeros((1, H), jnp.float32),
        "w1": xavier(ks[4], (H, F)), "b1": jnp.zeros((1, F), jnp.float32),
        "w2": xavier(ks[5], (F, H)), "b2": jnp.zeros((1, H), jnp.float32),
        "ln2_g": jnp.ones((1, H), jnp.float32),
        "ln2_b": jnp.zeros((1, H), jnp.float32),
    }


if __name__ == "__main__":
    B, T, H = 2, 8, 32           # batch, seq, hidden_size
    key = jax.random.PRNGKey(0)
    k_s, k_a, k_p = jax.random.split(key, 3)

    states = jax.random.normal(k_s, (B, T, H), jnp.float32)
    actions = jax.random.normal(k_a, (B, T, H), jnp.float32)
    # 1.0 = valid, 0.0 = padded; pad the tail of batch element 1
    pad_valid = jnp.ones((B, T), jnp.float32).at[1, 6:].set(0.0)

    params = init_params(k_p, H, dim_ff=4 * H)

    out = join_net_forward(states, actions, pad_valid, params)
    out = jax.block_until_ready(out)
    assert out.shape == (B, T, H), out.shape
    assert bool(jnp.all(jnp.isfinite(out)))
    print("KERNEL_OK")
</pallas_src>

<mosaic_0001>
module attributes {stable_mosaic.version = 11 : i64} {
  func.func @joinnet_kernel(%arg0: i32, %arg1: memref<1x32x32xf32, #tpu.memory_space<vmem>>, %arg2: memref<1x2x16xf32, #tpu.memory_space<vmem>>, %arg3: memref<32x96xbf16, #tpu.memory_space<vmem>>, %arg4: memref<32x32xbf16, #tpu.memory_space<vmem>>, %arg5: memref<32x128xbf16, #tpu.memory_space<vmem>>, %arg6: memref<128x32xbf16, #tpu.memory_space<vmem>>, %arg7: memref<10x128xf32, #tpu.memory_space<vmem>>, %arg8: memref<1x32x32xf32, #tpu.memory_space<vmem>>) attributes {dimension_semantics = [#tpu.dimension_semantics<parallel>], iteration_bounds = array<i64: 1>, scalar_prefetch = 0 : i64, scratch_operands = 0 : i64, tpu.core_type = #tpu.core_type<tc>, window_params = [{transform_indices = @transform_0, window_bounds = array<i64: 1, 32, 32>}, {transform_indices = @transform_1, window_bounds = array<i64: 1, 2, 16>}, {pipeline_mode = #tpu.pipeline_mode<synchronous>, transform_indices = @transform_2, window_bounds = array<i64: 32, 96>}, {pipeline_mode = #tpu.pipeline_mode<synchronous>, transform_indices = @transform_3, window_bounds = array<i64: 32, 32>}, {pipeline_mode = #tpu.pipeline_mode<synchronous>, transform_indices = @transform_4, window_bounds = array<i64: 32, 128>}, {pipeline_mode = #tpu.pipeline_mode<synchronous>, transform_indices = @transform_5, window_bounds = array<i64: 128, 32>}, {pipeline_mode = #tpu.pipeline_mode<synchronous>, transform_indices = @transform_6, window_bounds = array<i64: 10, 128>}, {transform_indices = @transform_7, window_bounds = array<i64: 1, 32, 32>}]} {
    %c0 = arith.constant 0 : index
    %c0_0 = arith.constant 0 : index
    %0 = vector.load %arg7[%c0, %c0_0] : memref<10x128xf32, #tpu.memory_space<vmem>>, vector<10x128xf32>
    %1 = vector.extract_strided_slice %0 {offsets = [0, 0], sizes = [1, 32], strides = [1, 1]} : vector<10x128xf32> to vector<1x32xf32>
    %2 = vector.extract_strided_slice %0 {offsets = [1, 0], sizes = [1, 32], strides = [1, 1]} : vector<10x128xf32> to vector<1x32xf32>
    %3 = vector.extract_strided_slice %0 {offsets = [2, 0], sizes = [1, 96], strides = [1, 1]} : vector<10x128xf32> to vector<1x96xf32>
    %4 = vector.extract_strided_slice %0 {offsets = [3, 0], sizes = [1, 32], strides = [1, 1]} : vector<10x128xf32> to vector<1x32xf32>
    %5 = vector.extract_strided_slice %0 {offsets = [4, 0], sizes = [1, 32], strides = [1, 1]} : vector<10x128xf32> to vector<1x32xf32>
    %6 = vector.extract_strided_slice %0 {offsets = [5, 0], sizes = [1, 32], strides = [1, 1]} : vector<10x128xf32> to vector<1x32xf32>
    %7 = vector.extract_strided_slice %0 {offsets = [6, 0], sizes = [1, 128], strides = [1, 1]} : vector<10x128xf32> to vector<1x128xf32>
    %8 = vector.extract_strided_slice %0 {offsets = [7, 0], sizes = [1, 32], strides = [1, 1]} : vector<10x128xf32> to vector<1x32xf32>
    %9 = vector.extract_strided_slice %0 {offsets = [8, 0], sizes = [1, 32], strides = [1, 1]} : vector<10x128xf32> to vector<1x32xf32>
    %10 = vector.extract_strided_slice %0 {offsets = [9, 0], sizes = [1, 32], strides = [1, 1]} : vector<10x128xf32> to vector<1x32xf32>
    %c0_1 = arith.constant 0 : index
    %c0_2 = arith.constant 0 : index
    %c0_3 = arith.constant 0 : index
    %11 = vector.load %arg1[%c0_1, %c0_2, %c0_3] : memref<1x32x32xf32, #tpu.memory_space<vmem>>, vector<1x32x32xf32>
    %12 = vector.shape_cast %11 : vector<1x32x32xf32> to vector<32x32xf32>
    %cst = arith.constant dense<0.000000e+00> : vector<32xf32>
    %13 = vector.multi_reduction <add>, %12, %cst [1] : vector<32x32xf32> to vector<32xf32>
    %14 = vector.shape_cast %13 : vector<32xf32> to vector<32x1xf32>
    %cst_4 = arith.constant 3.200000e+01 : f32
    %15 = vector.broadcast %cst_4 : f32 to vector<32x1xf32>
    %16 = arith.divf %14, %15 : vector<32x1xf32>
    %17 = vector.broadcast %16 : vector<32x1xf32> to vector<32x32xf32>
    %18 = arith.subf %12, %17 : vector<32x32xf32>
    %19 = arith.mulf %18, %18 : vector<32x32xf32>
    %cst_5 = arith.constant dense<0.000000e+00> : vector<32xf32>
    %20 = vector.multi_reduction <add>, %19, %cst_5 [1] : vector<32x32xf32> to vector<32xf32>
    %21 = vector.shape_cast %20 : vector<32xf32> to vector<32x1xf32>
    %cst_6 = arith.constant 3.200000e+01 : f32
    %22 = vector.broadcast %cst_6 : f32 to vector<32x1xf32>
    %23 = arith.divf %21, %22 : vector<32x1xf32>
    %24 = vector.broadcast %16 : vector<32x1xf32> to vector<32x32xf32>
    %25 = arith.subf %12, %24 : vector<32x32xf32>
    %cst_7 = arith.constant 9.99999974E-6 : f32
    %26 = vector.broadcast %cst_7 : f32 to vector<32x1xf32>
    %27 = arith.addf %23, %26 : vector<32x1xf32>
    %28 = math.rsqrt %27 : vector<32x1xf32>
    %29 = vector.broadcast %28 : vector<32x1xf32> to vector<32x32xf32>
    %30 = arith.mulf %25, %29 : vector<32x32xf32>
    %31 = vector.broadcast %1 : vector<1x32xf32> to vector<32x32xf32>
    %32 = arith.mulf %30, %31 : vector<32x32xf32>
    %33 = vector.broadcast %2 : vector<1x32xf32> to vector<32x32xf32>
    %34 = arith.addf %32, %33 : vector<32x32xf32>
    %35 = arith.truncf %34 : vector<32x32xf32> to vector<32x32xbf16>
    %c0_8 = arith.constant 0 : index
    %c0_9 = arith.constant 0 : index
    %36 = vector.load %arg3[%c0_8, %c0_9] : memref<32x96xbf16, #tpu.memory_space<vmem>>, vector<32x96xbf16>
    %cst_10 = arith.constant dense<0.000000e+00> : vector<32x96xf32>
    %37 = tpu.matmul %35, %36, %cst_10 {dimension_numbers = #tpu.dot_dimension_numbers<[1], [0], [0], [1], [0, 0, 1, 1], [], []>} : vector<32x32xbf16>, vector<32x96xbf16>, vector<32x96xf32> -> vector<32x96xf32>
    %38 = vector.broadcast %3 : vector<1x96xf32> to vector<32x96xf32>
    %39 = arith.addf %37, %38 : vector<32x96xf32>
    %40 = vector.shape_cast %39 : vector<32x96xf32> to vector<2x16x96xf32>
    %41 = tpu.iota {dimensions = array<i32: 0>} : vector<16x16xi32>
    %42 = tpu.iota {dimensions = array<i32: 1>} : vector<16x16xi32>
    %43 = arith.cmpi sle, %42, %41 : vector<16x16xi32>
    %c0_11 = arith.constant 0 : index
    %c0_12 = arith.constant 0 : index
    %c0_13 = arith.constant 0 : index
    %44 = vector.load %arg2[%c0_11, %c0_12, %c0_13] : memref<1x2x16xf32, #tpu.memory_space<vmem>>, vector<1x2x16xf32>
    %45 = vector.shape_cast %44 : vector<1x2x16xf32> to vector<2x16xf32>
    %cst_14 = arith.constant 5.000000e-01 : f32
    %46 = vector.broadcast %cst_14 : f32 to vector<2x16xf32>
    %47 = arith.cmpf ogt, %45, %46 : vector<2x16xf32>
    %48 = vector.shape_cast %43 : vector<16x16xi1> to vector<1x16x16xi1>
    %49 = vector.shape_cast %47 : vector<2x16xi1> to vector<2x1x16xi1>
    %50 = vector.broadcast %48 : vector<1x16x16xi1> to vector<2x16x16xi1>
    %51 = vector.broadcast %49 : vector<2x1x16xi1> to vector<2x16x16xi1>
    %52 = arith.andi %50, %51 : vector<2x16x16xi1>
    %c0_15 = arith.constant 0 : index
    %c0_16 = arith.constant 0 : index
    %53 = vector.load %arg4[%c0_15, %c0_16] : memref<32x32xbf16, #tpu.memory_space<vmem>>, vector<32x32xbf16>
    %54 = vector.extract_strided_slice %40 {offsets = [0, 0, 0], sizes = [2, 16, 16], strides = [1, 1, 1]} : vector<2x16x96xf32> to vector<2x16x16xf32>
    %cst_17 = arith.constant 2.500000e-01 : f32
    %55 = vector.broadcast %cst_17 : f32 to vector<2x16x16xf32>
    %56 = arith.mulf %54, %55 : vector<2x16x16xf32>
    %57 = arith.truncf %56 : vector<2x16x16xf32> to vector<2x16x16xbf16>
    %58 = vector.extract_strided_slice %40 {offsets = [0, 0, 32], sizes = [2, 16, 16], strides = [1, 1, 1]} : vector<2x16x96xf32> to vector<2x16x16xf32>
    %59 = arith.truncf %58 : vector<2x16x16xf32> to vector<2x16x16xbf16>
    %60 = vector.extract_strided_slice %40 {offsets = [0, 0, 64], sizes = [2, 16, 16], strides = [1, 1, 1]} : vector<2x16x96xf32> to vector<2x16x16xf32>
    %61 = arith.truncf %60 : vector<2x16x16xf32> to vector<2x16x16xbf16>
    "tpu.trace_start"() <{level = 10 : i32, message = "bqd,bkd->bqk"}> : () -> ()
    %cst_18 = arith.constant dense<0.000000e+00> : vector<2x16x16xf32>
    %62 = tpu.matmul %57, %59, %cst_18 {dimension_numbers = #tpu.dot_dimension_numbers<[2], [2], [1], [1], [0, 0, 0, 1, 1, 1], [0], [0]>} : vector<2x16x16xbf16>, vector<2x16x16xbf16>, vector<2x16x16xf32> -> vector<2x16x16xf32>
    %cst_19 = arith.constant -1.000000e+30 : f32
    "tpu.trace_stop"() : () -> ()
    %63 = vector.broadcast %cst_19 : f32 to vector<2x16x16xf32>
    %64 = arith.select %52, %62, %63 : vector<2x16x16xi1>, vector<2x16x16xf32>
    %cst_20 = arith.constant dense<0xFF800000> : vector<2x16xf32>
    %65 = vector.multi_reduction <maximumf>, %64, %cst_20 [2] : vector<2x16x16xf32> to vector<2x16xf32>
    %66 = vector.shape_cast %65 : vector<2x16xf32> to vector<2x16x1xf32>
    %67 = vector.broadcast %66 : vector<2x16x1xf32> to vector<2x16x16xf32>
    %68 = arith.subf %64, %67 : vector<2x16x16xf32>
    %69 = math.exp %68 : vector<2x16x16xf32>
    %cst_21 = arith.constant dense<0.000000e+00> : vector<2x16xf32>
    %70 = vector.multi_reduction <add>, %69, %cst_21 [2] : vector<2x16x16xf32> to vector<2x16xf32>
    %71 = vector.shape_cast %70 : vector<2x16xf32> to vector<2x16x1xf32>
    %72 = tpu.reciprocal %71 {approx = true} : vector<2x16x1xf32> -> vector<2x16x1xf32>
    %73 = vector.broadcast %72 : vector<2x16x1xf32> to vector<2x16x16xf32>
    %74 = arith.mulf %69, %73 : vector<2x16x16xf32>
    %75 = arith.truncf %74 : vector<2x16x16xf32> to vector<2x16x16xbf16>
    "tpu.trace_start"() <{level = 10 : i32, message = "bqk,bkd->bqd"}> : () -> ()
    %cst_22 = arith.constant dense<0.000000e+00> : vector<2x16x16xf32>
    %76 = tpu.matmul %75, %61, %cst_22 {dimension_numbers = #tpu.dot_dimension_numbers<[2], [1], [1], [2], [0, 0, 0, 1, 1, 2], [0], [0]>} : vector<2x16x16xbf16>, vector<2x16x16xbf16>, vector<2x16x16xf32> -> vector<2x16x16xf32>
    "tpu.trace_stop"() : () -> ()
    %77 = vector.shape_cast %76 : vector<2x16x16xf32> to vector<32x16xf32>
    %78 = arith.truncf %77 : vector<32x16xf32> to vector<32x16xbf16>
    %79 = vector.extract_strided_slice %53 {offsets = [0, 0], sizes = [16, 32], strides = [1, 1]} : vector<32x32xbf16> to vector<16x32xbf16>
    %cst_23 = arith.constant dense<0.000000e+00> : vector<32x32xf32>
    %80 = tpu.matmul %78, %79, %cst_23 {dimension_numbers = #tpu.dot_dimension_numbers<[1], [0], [0], [1], [0, 0, 1, 1], [], []>} : vector<32x16xbf16>, vector<16x32xbf16>, vector<32x32xf32> -> vector<32x32xf32>
    %81 = vector.broadcast %4 : vector<1x32xf32> to vector<32x32xf32>
    %82 = arith.addf %81, %80 : vector<32x32xf32>
    %83 = vector.extract_strided_slice %40 {offsets = [0, 0, 16], sizes = [2, 16, 16], strides = [1, 1, 1]} : vector<2x16x96xf32> to vector<2x16x16xf32>
    %cst_24 = arith.constant 2.500000e-01 : f32
    %84 = vector.broadcast %cst_24 : f32 to vector<2x16x16xf32>
    %85 = arith.mulf %83, %84 : vector<2x16x16xf32>
    %86 = arith.truncf %85 : vector<2x16x16xf32> to vector<2x16x16xbf16>
    %87 = vector.extract_strided_slice %40 {offsets = [0, 0, 48], sizes = [2, 16, 16], strides = [1, 1, 1]} : vector<2x16x96xf32> to vector<2x16x16xf32>
    %88 = arith.truncf %87 : vector<2x16x16xf32> to vector<2x16x16xbf16>
    %89 = vector.extract_strided_slice %40 {offsets = [0, 0, 80], sizes = [2, 16, 16], strides = [1, 1, 1]} : vector<2x16x96xf32> to vector<2x16x16xf32>
    %90 = arith.truncf %89 : vector<2x16x16xf32> to vector<2x16x16xbf16>
    "tpu.trace_start"() <{level = 10 : i32, message = "bqd,bkd->bqk"}> : () -> ()
    %cst_25 = arith.constant dense<0.000000e+00> : vector<2x16x16xf32>
    %91 = tpu.matmul %86, %88, %cst_25 {dimension_numbers = #tpu.dot_dimension_numbers<[2], [2], [1], [1], [0, 0, 0, 1, 1, 1], [0], [0]>} : vector<2x16x16xbf16>, vector<2x16x16xbf16>, vector<2x16x16xf32> -> vector<2x16x16xf32>
    %cst_26 = arith.constant -1.000000e+30 : f32
    "tpu.trace_stop"() : () -> ()
    %92 = vector.broadcast %cst_26 : f32 to vector<2x16x16xf32>
    %93 = arith.select %52, %91, %92 : vector<2x16x16xi1>, vector<2x16x16xf32>
    %cst_27 = arith.constant dense<0xFF800000> : vector<2x16xf32>
    %94 = vector.multi_reduction <maximumf>, %93, %cst_27 [2] : vector<2x16x16xf32> to vector<2x16xf32>
    %95 = vector.shape_cast %94 : vector<2x16xf32> to vector<2x16x1xf32>
    %96 = vector.broadcast %95 : vector<2x16x1xf32> to vector<2x16x16xf32>
    %97 = arith.subf %93, %96 : vector<2x16x16xf32>
    %98 = math.exp %97 : vector<2x16x16xf32>
    %cst_28 = arith.constant dense<0.000000e+00> : vector<2x16xf32>
    %99 = vector.multi_reduction <add>, %98, %cst_28 [2] : vector<2x16x16xf32> to vector<2x16xf32>
    %100 = vector.shape_cast %99 : vector<2x16xf32> to vector<2x16x1xf32>
    %101 = tpu.reciprocal %100 {approx = true} : vector<2x16x1xf32> -> vector<2x16x1xf32>
    %102 = vector.broadcast %101 : vector<2x16x1xf32> to vector<2x16x16xf32>
    %103 = arith.mulf %98, %102 : vector<2x16x16xf32>
    %104 = arith.truncf %103 : vector<2x16x16xf32> to vector<2x16x16xbf16>
    "tpu.trace_start"() <{level = 10 : i32, message = "bqk,bkd->bqd"}> : () -> ()
    %cst_29 = arith.constant dense<0.000000e+00> : vector<2x16x16xf32>
    %105 = tpu.matmul %104, %90, %cst_29 {dimension_numbers = #tpu.dot_dimension_numbers<[2], [1], [1], [2], [0, 0, 0, 1, 1, 2], [0], [0]>} : vector<2x16x16xbf16>, vector<2x16x16xbf16>, vector<2x16x16xf32> -> vector<2x16x16xf32>
    "tpu.trace_stop"() : () -> ()
    %106 = vector.shape_cast %105 : vector<2x16x16xf32> to vector<32x16xf32>
    %107 = arith.truncf %106 : vector<32x16xf32> to vector<32x16xbf16>
    %108 = vector.extract_strided_slice %53 {offsets = [16, 0], sizes = [16, 32], strides = [1, 1]} : vector<32x32xbf16> to vector<16x32xbf16>
    %cst_30 = arith.constant dense<0.000000e+00> : vector<32x32xf32>
    %109 = tpu.matmul %107, %108, %cst_30 {dimension_numbers = #tpu.dot_dimension_numbers<[1], [0], [0], [1], [0, 0, 1, 1], [], []>} : vector<32x16xbf16>, vector<16x32xbf16>, vector<32x32xf32> -> vector<32x32xf32>
    %110 = arith.addf %82, %109 : vector<32x32xf32>
    %111 = arith.addf %34, %110 : vector<32x32xf32>
    %cst_31 = arith.constant dense<0.000000e+00> : vector<32xf32>
    %112 = vector.multi_reduction <add>, %111, %cst_31 [1] : vector<32x32xf32> to vector<32xf32>
    %113 = vector.shape_cast %112 : vector<32xf32> to vector<32x1xf32>
    %cst_32 = arith.constant 3.200000e+01 : f32
    %114 = vector.broadcast %cst_32 : f32 to vector<32x1xf32>
    %115 = arith.divf %113, %114 : vector<32x1xf32>
    %116 = vector.broadcast %115 : vector<32x1xf32> to vector<32x32xf32>
    %117 = arith.subf %111, %116 : vector<32x32xf32>
    %118 = arith.mulf %117, %117 : vector<32x32xf32>
    %cst_33 = arith.constant dense<0.000000e+00> : vector<32xf32>
    %119 = vector.multi_reduction <add>, %118, %cst_33 [1] : vector<32x32xf32> to vector<32xf32>
    %120 = vector.shape_cast %119 : vector<32xf32> to vector<32x1xf32>
    %cst_34 = arith.constant 3.200000e+01 : f32
    %121 = vector.broadcast %cst_34 : f32 to vector<32x1xf32>
    %122 = arith.divf %120, %121 : vector<32x1xf32>
    %123 = vector.broadcast %115 : vector<32x1xf32> to vector<32x32xf32>
    %124 = arith.subf %111, %123 : vector<32x32xf32>
    %cst_35 = arith.constant 9.99999974E-6 : f32
    %125 = vector.broadcast %cst_35 : f32 to vector<32x1xf32>
    %126 = arith.addf %122, %125 : vector<32x1xf32>
    %127 = math.rsqrt %126 : vector<32x1xf32>
    %128 = vector.broadcast %127 : vector<32x1xf32> to vector<32x32xf32>
    %129 = arith.mulf %124, %128 : vector<32x32xf32>
    %130 = vector.broadcast %5 : vector<1x32xf32> to vector<32x32xf32>
    %131 = arith.mulf %129, %130 : vector<32x32xf32>
    %132 = vector.broadcast %6 : vector<1x32xf32> to vector<32x32xf32>
    %133 = arith.addf %131, %132 : vector<32x32xf32>
    %134 = arith.truncf %133 : vector<32x32xf32> to vector<32x32xbf16>
    %c0_36 = arith.constant 0 : index
    %c0_37 = arith.constant 0 : index
    %135 = vector.load %arg5[%c0_36, %c0_37] : memref<32x128xbf16, #tpu.memory_space<vmem>>, vector<32x128xbf16>
    %cst_38 = arith.constant dense<0.000000e+00> : vector<32x128xf32>
    %136 = tpu.matmul %134, %135, %cst_38 {dimension_numbers = #tpu.dot_dimension_numbers<[1], [0], [0], [1], [0, 0, 1, 1], [], []>} : vector<32x32xbf16>, vector<32x128xbf16>, vector<32x128xf32> -> vector<32x128xf32>
    %137 = vector.broadcast %7 : vector<1x128xf32> to vector<32x128xf32>
    %138 = arith.addf %136, %137 : vector<32x128xf32>
    %cst_39 = arith.constant 0.000000e+00 : f32
    %139 = vector.broadcast %cst_39 : f32 to vector<32x128xf32>
    %140 = arith.maximumf %138, %139 : vector<32x128xf32>
    %141 = arith.truncf %140 : vector<32x128xf32> to vector<32x128xbf16>
    %c0_40 = arith.constant 0 : index
    %c0_41 = arith.constant 0 : index
    %142 = vector.load %arg6[%c0_40, %c0_41] : memref<128x32xbf16, #tpu.memory_space<vmem>>, vector<128x32xbf16>
    %cst_42 = arith.constant dense<0.000000e+00> : vector<32x32xf32>
    %143 = tpu.matmul %141, %142, %cst_42 {dimension_numbers = #tpu.dot_dimension_numbers<[1], [0], [0], [1], [0, 0, 1, 1], [], []>} : vector<32x128xbf16>, vector<128x32xbf16>, vector<32x32xf32> -> vector<32x32xf32>
    %144 = vector.broadcast %8 : vector<1x32xf32> to vector<32x32xf32>
    %145 = arith.addf %143, %144 : vector<32x32xf32>
    %146 = arith.addf %133, %145 : vector<32x32xf32>
    %cst_43 = arith.constant dense<0.000000e+00> : vector<32xf32>
    %147 = vector.multi_reduction <add>, %146, %cst_43 [1] : vector<32x32xf32> to vector<32xf32>
    %148 = vector.shape_cast %147 : vector<32xf32> to vector<32x1xf32>
    %cst_44 = arith.constant 3.200000e+01 : f32
    %149 = vector.broadcast %cst_44 : f32 to vector<32x1xf32>
    %150 = arith.divf %148, %149 : vector<32x1xf32>
    %151 = vector.broadcast %150 : vector<32x1xf32> to vector<32x32xf32>
    %152 = arith.subf %146, %151 : vector<32x32xf32>
    %153 = arith.mulf %152, %152 : vector<32x32xf32>
    %cst_45 = arith.constant dense<0.000000e+00> : vector<32xf32>
    %154 = vector.multi_reduction <add>, %153, %cst_45 [1] : vector<32x32xf32> to vector<32xf32>
    %155 = vector.shape_cast %154 : vector<32xf32> to vector<32x1xf32>
    %cst_46 = arith.constant 3.200000e+01 : f32
    %156 = vector.broadcast %cst_46 : f32 to vector<32x1xf32>
    %157 = arith.divf %155, %156 : vector<32x1xf32>
    %158 = vector.broadcast %150 : vector<32x1xf32> to vector<32x32xf32>
    %159 = arith.subf %146, %158 : vector<32x32xf32>
    %cst_47 = arith.constant 9.99999974E-6 : f32
    %160 = vector.broadcast %cst_47 : f32 to vector<32x1xf32>
    %161 = arith.addf %157, %160 : vector<32x1xf32>
    %162 = math.rsqrt %161 : vector<32x1xf32>
    %163 = vector.broadcast %162 : vector<32x1xf32> to vector<32x32xf32>
    %164 = arith.mulf %159, %163 : vector<32x32xf32>
    %165 = vector.broadcast %9 : vector<1x32xf32> to vector<32x32xf32>
    %166 = arith.mulf %164, %165 : vector<32x32xf32>
    %167 = vector.broadcast %10 : vector<1x32xf32> to vector<32x32xf32>
    %168 = arith.addf %166, %167 : vector<32x32xf32>
    %c0_48 = arith.constant 0 : index
    %c0_49 = arith.constant 0 : index
    %c0_50 = arith.constant 0 : index
    %169 = vector.load %arg8[%c0_48, %c0_49, %c0_50] : memref<1x32x32xf32, #tpu.memory_space<vmem>>, vector<1x32x32xf32>
    %170 = vector.shape_cast %169 : vector<1x32x32xf32> to vector<32x32xf32>
    %171 = vector.shape_cast %168 : vector<32x32xf32> to vector<1x32x32xf32>
    tpu.vector_store %arg8[%c0_48, %c0_49, %c0_50], %171 {strides = array<i32>} : memref<1x32x32xf32, #tpu.memory_space<vmem>>, vector<1x32x32xf32>,
    return
  }
  func.func @transform_0(%arg0: i32) -> (i32, i32, i32) {
    %c0_i32 = arith.constant 0 : i32
    %c0_i32_0 = arith.constant 0 : i32
    %c0_i32_1 = arith.constant 0 : i32
    return %arg0, %c0_i32, %c0_i32_0 : i32, i32, i32
  }
  func.func @transform_1(%arg0: i32) -> (i32, i32, i32) {
    %c0_i32 = arith.constant 0 : i32
    %c0_i32_0 = arith.constant 0 : i32
    %c0_i32_1 = arith.constant 0 : i32
    return %arg0, %c0_i32, %c0_i32_0 : i32, i32, i32
  }
  func.func @transform_2(%arg0: i32) -> (i32, i32) {
    %c0_i32 = arith.constant 0 : i32
    %c0_i32_0 = arith.constant 0 : i32
    %c0_i32_1 = arith.constant 0 : i32
    return %c0_i32, %c0_i32_0 : i32, i32
  }
  func.func @transform_3(%arg0: i32) -> (i32, i32) {
    %c0_i32 = arith.constant 0 : i32
    %c0_i32_0 = arith.constant 0 : i32
    %c0_i32_1 = arith.constant 0 : i32
    return %c0_i32, %c0_i32_0 : i32, i32
  }
  func.func @transform_4(%arg0: i32) -> (i32, i32) {
    %c0_i32 = arith.constant 0 : i32
    %c0_i32_0 = arith.constant 0 : i32
    %c0_i32_1 = arith.constant 0 : i32
    return %c0_i32, %c0_i32_0 : i32, i32
  }
  func.func @transform_5(%arg0: i32) -> (i32, i32) {
    %c0_i32 = arith.constant 0 : i32
    %c0_i32_0 = arith.constant 0 : i32
    %c0_i32_1 = arith.constant 0 : i32
    return %c0_i32, %c0_i32_0 : i32, i32
  }
  func.func @transform_6(%arg0: i32) -> (i32, i32) {
    %c0_i32 = arith.constant 0 : i32
    %c0_i32_0 = arith.constant 0 : i32
    %c0_i32_1 = arith.constant 0 : i32
    return %c0_i32, %c0_i32_0 : i32, i32
  }
  func.func @transform_7(%arg0: i32) -> (i32, i32, i32) {
    %c0_i32 = arith.constant 0 : i32
    %c0_i32_0 = arith.constant 0 : i32
    %c0_i32_1 = arith.constant 0 : i32
    return %arg0, %c0_i32, %c0_i32_0 : i32, i32, i32
  }
}

</mosaic_0001>

<bundles_post_ra>
// kernel: tpu_custom_call.1
= control target key start
LH: loop header
LB: loop body
LE: loop exit
PB: predicated region body
PF: predicated region fallthrough
CT: control target
= control target key end

     0   :  { %12 = vsyncpa [#allocation3], 0  ;;  %s1587_s0 = inlined_call_operand.vmem [shape: f32[1,32,32], index: 0, kind: input, shape index: {}]   ;;  %s1588_s1 = inlined_call_operand.hbm [shape: f32[1,2,16], index: 1, kind: input, shape index: {}]   ;;  %s1589_s2 = inlined_call_operand.vmem [shape: bf16[32,96], index: 2, kind: input, shape index: {}]   ;;  %s1590_s3 = inlined_call_operand.vmem [shape: bf16[32,32], index: 3, kind: input, shape index: {}]   ;;  %s1591_s4 = inlined_call_operand.vmem [shape: bf16[32,128], index: 4, kind: input, shape index: {}]   ;;  %s1592_s5 = inlined_call_operand.vmem [shape: bf16[128,32], index: 5, kind: input, shape index: {}]   ;;  %s1593_s6 = inlined_call_operand.hbm [shape: f32[10,128], index: 6, kind: input, shape index: {}]   ;;  %s1594_s7 = inlined_call_operand.hbm [shape: f32[1,32,32], index: 7, kind: output, shape index: {}]  }
   0x1   :  { %13 = vsyncpa [#allocation6], 0 }
   0x2   :  { %14 = vsyncpa [#allocation4], 0  ;;  %s22_s26 = sshll.u32 %s1588_s1, 4  ;;  %s1245_s27 = smov [#allocation2]   ;;  %s23_s26 = int_to_ptr.hbm [resolvable:$true] %s22_s26 }
   0x3   :  { %s24_s28 = sshll.u32 %s1245_s27, 4  ;;  %s40_s8 = sshll.u32 %s1593_s6, 4  ;;  %s25_s28 = int_to_ptr.vmem [resolvable:$true] %s24_s28  ;;  %s41_s8 = int_to_ptr.hbm [resolvable:$true] %s40_s8 }
   0x4   :  { %27 = dma.hbm_to_vmem [thread:$0]  %s23_s26, 32, %s25_s28, [#allocation3]  }
   0x5   :  { %s1246_s9 = smov [#allocation5]   ;;  %s1247_s11 = smov 128  }
   0x6   :  { %s42_s10 = sshll.u32 %s1246_s9, 4  ;;  %s1248_s12 = smov 8   ;;  %s43_s10 = int_to_ptr.vmem [resolvable:$true] %s42_s10 }
   0x7   :  { %48 = dma.hbm_to_vmem [thread:$0]  %s41_s8, 256, %s43_s10, [#allocation6], %s1247_s11, %s1247_s11, %s1248_s12  }
   0x8   :  { %1239 = dma.done.wait [#allocation3], 32  }
   0x9   :  { %1240 = vsyncadd [#allocation3], 4294967264 }
   0xa   :  { %1241 = dma.done.wait [#allocation6], 256  }
   0xb   :  { %1242 = vsyncadd [#allocation6], 4294967040  ;;  %vm64_vm0 = vcmask 261120   ;;  %v62_v0 = vld [vmem:[%s1587_s0 + $0x10] sm:$0xff]  ;;  %v60_v1 = vld [vmem:[%s1587_s0] sm:$0xff]  ;;  %v1249_v8 = vmov 32.0  }
   0xc   :  { %v71_v2 = vsel %vm64_vm0, %v62_v0, 0.0  ;;  %v65_v3 = vsel %vm64_vm0, %v60_v1, 0.0  ;;  %v63_v4 = vld [vmem:[%s1587_s0 + $0x18] sm:$0xff]  ;;  %v61_v5 = vld [vmem:[%s1587_s0 + $0x8] sm:$0xff]  ;;  %1109 = vrcp.f32 %v1249_v8  ;;  %v1081_v40 = vld [vmem:[%s1589_s2] sm:$0xff]  ;;  %vm267_vm14 = vcmask 130048  }
   0xd   :  { %72 = vadd.xlane.f32.xlu1 %v71_v2  ;;  %66 = vadd.xlane.f32.xlu0 %v65_v3  ;;  %v74_v6 = vsel %vm64_vm0, %v63_v4, 0.0  ;;  %v68_v7 = vsel %vm64_vm0, %v61_v5, 0.0  ;;  %v1082_v35 = vld [vmem:[%s1589_s2 + $0x8] sm:$0xff]  ;;  %s1250_s2 = smov 96   ;;  %s1252_s22 = smov 80  }
   0xe   :  { %201 = vmatpush.bf16.msra.mxu0 %v1082_v35  ;;  %1095 = vmatpush.bf16.msra.mxu2 %v1082_v35  ;;  %s1253_s23 = smov 64   ;;  %s1254_s24 = smov 112  }
   0xf   :  { %s1255_s27 = smov 48   ;;  %s995_s26 = sshll.u32 %s1594_s7, 4  ;;  %s996_s26 = int_to_ptr.hbm [resolvable:$true] %s995_s26 }
  0x12   :  { %v1110_v9 = vpop.eup %1109  ;;  %202 = vmatpush.bf16.msra.mxu0 %v1081_v40  ;;  %1096 = vmatpush.bf16.msra.mxu2 %v1081_v40 }
  0x13   :  { %v78_v10 = vmul.f32 32.0, %v1110_v9  ;;  %vm82_vm1 = vweird.f32 %v1110_v9 }
  0x15   :  { %75 = vadd.xlane.f32.xlu1 %v74_v6  ;;  %69 = vadd.xlane.f32.xlu0 %v68_v7  ;;  %v79_v11 = vsub.f32 1.0, %v78_v10 }
  0x17   :  { %v80_v12 = vmul.f32 %v1110_v9, %v79_v11 }
  0x19   :  { %v81_v13 = vadd.f32 %v1110_v9, %v80_v12 }
  0x1b   :  { %v1322_v14 = vsel %vm82_vm1, %v1110_v9, %v81_v13 }
  0x80   :  { %v73_v15 = vpop.xlane.xlu1 %72  ;;  %v67_v16 = vpop.xlane.xlu0 %66 }
  0x81   :  { %v86_v17 = vmul.f32 %v1322_v14, %v73_v15  ;;  %v84_v18 = vmul.f32 %v1322_v14, %v67_v16 }
  0x83   :  { %v1326_v19 = vsub.f32 %v62_v0, %v86_v17  ;;  %v1328_v20 = vsub.f32 %v60_v1, %v84_v18 }
  0x85   :  { %v94_v21 = vmul.f32 %v1326_v19, %v1326_v19  ;;  %v92_v22 = vmul.f32 %v1328_v20, %v1328_v20 }
  0x87   :  { %v102_v23 = vsel %vm64_vm0, %v94_v21, 0.0  ;;  %v96_v24 = vsel %vm64_vm0, %v92_v22, 0.0 }
  0x88   :  { %v76_v25 = vpop.xlane.xlu1 %75  ;;  %103 = vadd.xlane.f32.xlu0 %v102_v23  ;;  %97 = vadd.xlane.f32.xlu2 %v96_v24  ;;  %v70_v26 = vpop.xlane.xlu0 %69 }
  0x89   :  { %v87_v27 = vmul.f32 %v1322_v14, %v76_v25  ;;  %v85_v28 = vmul.f32 %v1322_v14, %v70_v26 }
  0x8b   :  { %v1338_v29 = vsub.f32 %v63_v4, %v87_v27  ;;  %v1340_v30 = vsub.f32 %v61_v5, %v85_v28  ;;  %v1358_v5 = vld [vmem:[#allocation5] sm:$0xff] }
  0x8c   :  { %v160_v11 = vperm.slane %v1358_v5, 0  ;;  %v165_v21 = vperm.slane %v1358_v5, 1 }
  0x8d   :  { %v95_v31 = vmul.f32 %v1338_v29, %v1338_v29  ;;  %v93_v32 = vmul.f32 %v1340_v30, %v1340_v30 }
  0x8f   :  { %v105_v33 = vsel %vm64_vm0, %v95_v31, 0.0  ;;  %v99_v34 = vsel %vm64_vm0, %v93_v32, 0.0 }
  0x90   :  { %106 = vadd.xlane.f32.xlu1 %v105_v33  ;;  %100 = vadd.xlane.f32.xlu2 %v99_v34 }
  0xfb   :  { %v98_v36 = vpop.xlane.xlu2 %97  ;;  %v104_v37 = vpop.xlane.xlu0 %103 }
  0xfc   :  { %v108_v38 = vmul.f32 %v98_v36, %v1322_v14  ;;  %v110_v39 = vmul.f32 %v104_v37, %v1322_v14 }
  0xfe   :  { %v112_v41 = vadd.f32 1e-05, %v108_v38  ;;  %v114_v42 = vadd.f32 1e-05, %v110_v39 }
 0x100   :  { %1111 = vrsqrt.f32 %v112_v41  ;;  %vm142_vm2 = vweird.f32 %v114_v42  ;;  %vm122_vm6 = vweird.f32 %v112_v41 }
 0x101   :  { %1113 = vrsqrt.f32 %v114_v42 }
 0x103   :  { %v107_v43 = vpop.xlane.xlu1 %106  ;;  %v101_v44 = vpop.xlane.xlu2 %100 }
 0x104   :  { %v111_v45 = vmul.f32 %v107_v43, %v1322_v14  ;;  %v109_v46 = vmul.f32 %v101_v44, %v1322_v14 }
 0x106   :  { %v1112_v47 = vpop.eup %1111  ;;  %v115_v48 = vadd.f32 1e-05, %v111_v45  ;;  %v113_v49 = vadd.f32 1e-05, %v109_v46 }
 0x107   :  { %v1114_v50 = vpop.eup %1113  ;;  %v117_v51 = vmul.f32 %v1112_v47, %v112_v41  ;;  %vm123_vm4 = vweird.f32 %v1112_v47 }
 0x108   :  { %v137_v52 = vmul.f32 %v1114_v50, %v114_v42  ;;  %1115 = vrsqrt.f32 %v115_v48  ;;  %vm143_vm3 = vweird.f32 %v1114_v50  ;;  %vm124_vm7 = vmor %vm122_vm6, %vm123_vm4  ;;  %vm152_vm8 = vweird.f32 %v115_v48 }
 0x109   :  { %v118_v53 = vmul.f32 %v1112_v47, %v117_v51  ;;  %1117 = vrsqrt.f32 %v113_v49  ;;  %vm144_vm5 = vmor %vm142_vm2, %vm143_vm3  ;;  %vm132_vm12 = vweird.f32 %v113_v49 }
 0x10a   :  { %v138_v54 = vmul.f32 %v1114_v50, %v137_v52 }
 0x10b   :  { %v119_v55 = vmul.f32 0.5, %v118_v53 }
 0x10c   :  { %v139_v56 = vmul.f32 0.5, %v138_v54 }
 0x10d   :  { %v120_v57 = vsub.f32 1.5, %v119_v55 }
 0x10e   :  { %v1116_v58 = vpop.eup %1115  ;;  %v140_v59 = vsub.f32 1.5, %v139_v56 }
 0x10f   :  { %v1118_v60 = vpop.eup %1117  ;;  %v147_v61 = vmul.f32 %v1116_v58, %v115_v48  ;;  %v121_v62 = vmul.f32 %v1112_v47, %v120_v57  ;;  %vm153_vm9 = vweird.f32 %v1116_v58 }
 0x110   :  { %v141_v63 = vmul.f32 %v1114_v50, %v140_v59  ;;  %v127_v0 = vmul.f32 %v1118_v60, %v113_v49  ;;  %vm154_vm10 = vmor %vm152_vm8, %vm153_vm9  ;;  %vm133_vm11 = vweird.f32 %v1118_v60 }
 0x111   :  { %v148_v1 = vmul.f32 %v1116_v58, %v147_v61  ;;  %v125_v6 = vsel %vm124_vm7, %v1112_v47, %v121_v62  ;;  %vm134_vm13 = vmor %vm132_vm12, %vm133_vm11 }
 0x112   :  { %v128_v2 = vmul.f32 %v1118_v60, %v127_v0  ;;  %v145_v3 = vsel %vm144_vm5, %v1114_v50, %v141_v63  ;;  %v156_v12 = vmul.f32 %v125_v6, %v1328_v20  ;;  %v214_v6 = vlaneseq }
 0x113   :  { %v149_v4 = vmul.f32 0.5, %v148_v1  ;;  %v158_v9 = vmul.f32 %v145_v3, %v1326_v19 }
 0x114   :  { %v129_v7 = vmul.f32 0.5, %v128_v2  ;;  %v161_v23 = vmul.f32 %v160_v11, %v156_v12 }
 0x115   :  { %v150_v8 = vsub.f32 1.5, %v149_v4  ;;  %v163_v22 = vmul.f32 %v160_v11, %v158_v9  ;;  %v221_v4 = vld [vmem:[#allocation2] sm:$0x3]  ;;  %v215_v9 = vshrl.u32 %v214_v6, 7 }
 0x116   :  { %v130_v10 = vsub.f32 1.5, %v129_v7  ;;  %v1370_v20 = vadd.f32 %v165_v21, %v161_v23  ;;  %vm222_vm15 = vcmp.gt.f32.partialorder %v221_v4, 0.5  ;;  %v1251_v7 = vmov 0  }
 0x117   :  { %v151_v13 = vmul.f32 %v1116_v58, %v150_v8  ;;  %v1366_v26 = vadd.f32 %v165_v21, %v163_v22  ;;  %v223_v8 = vsel %vm222_vm15, 1, %v1251_v7 }
 0x118   :  { %v131_v15 = vmul.f32 %v1118_v60, %v130_v10  ;;  %v218_v10 = vand.u32 127, %v214_v6  ;;  %v224_v23 = vrot.slane %v223_v8, 1 }
 0x119   :  { %v155_v16 = vsel %vm154_vm10, %v1116_v58, %v151_v13  ;;  %v216_v13 = vadd.s32 8, %v215_v9 }
 0x11a   :  { %v159_v17 = vmul.f32 %v155_v16, %v1338_v29  ;;  %v135_v18 = vsel %vm134_vm13, %v1118_v60, %v131_v15  ;;  %vm219_vm1 = vcmp.le.s32.totalorder %v218_v10, %v215_v9  ;;  %vm225_vm6 = vcmp.ne.s32.totalorder %v224_v23, 0 }
 0x11b   :  { %v157_v19 = vmul.f32 %v135_v18, %v1340_v30  ;;  %v176_v30 = vperm.slane %v1358_v5, 2  ;;  %vm220_vm4 = vcmp.le.s32.totalorder %v218_v10, %v216_v13 }
 0x11c   :  { %v164_v24 = vmul.f32 %v160_v11, %v159_v17 }
 0x11d   :  { %v162_v25 = vmul.f32 %v160_v11, %v157_v19  ;;  %v231_v11 = vperm.slane %v223_v8, 0 }
 0x11e   :  { %v1368_v27 = vadd.f32 %v165_v21, %v164_v24  ;;  %v230_v24 = vsel %vm225_vm6, 1, %v1251_v7 }
 0x11f   :  { %v1372_v28 = vadd.f32 %v165_v21, %v162_v25  ;;  %vm233_vm2 = vcmp.eq.s32.totalorder %v231_v11, 1  ;;  %v232_v25 = vperm.slane %v230_v24, 0 }
 0x120   :  { %v171_v29 = vpack.c.bf16 %v1368_v27, %v1366_v26  ;;  %vm1398_vm3 = vmand %vm219_vm1, %vm233_vm2 }
 0x121   :  { %v170_v31 = vpack.c.bf16 %v1372_v28, %v1370_v20  ;;  %vm1406_vm5 = vmand %vm220_vm4, %vm233_vm2  ;;  %vm234_vm7 = vcmp.eq.s32.totalorder %v232_v25, 1 }
 0x122   :  { %1018 = vmatmul.msk.bf16.vlgmr.msra.gmra.mxu2 %vm64_vm0, %v171_v29  ;;  %vm1414_vm8 = vmand %vm219_vm1, %vm234_vm7 }
 0x123   :  { %1017 = vmatmul.msk.bf16.vlgmr.msra.gmra.mxu0 %vm64_vm0, %v170_v31  ;;  %vm1422_vm9 = vmand %vm220_vm4, %vm234_vm7 }
 0x1a0   :  { %v204_v32 = vpop.f32.mrf.mxu0 }
 0x1a1   :  { %v205_v33 = vadd.f32 %v204_v32, %v176_v30 }
 0x1a3   :  { %v243_v35 = vmul.f32 0.25, %v205_v33  ;;  %v251_v38 = vpack.c.bf16 %v205_v33, %v205_v33 }
 0x1a5   :  { %v209_v34 = vpop.f32.mrf.mxu2  ;;  %v247_v40 = vpack.c.bf16 %v243_v35, %v243_v35  ;;  %v262_v44 = vunpack.c.l.b16 %v251_v38 }
 0x1a6   :  { %v210_v36 = vadd.f32 %v209_v34, %v176_v30 }
 0x1a7   :  { %v257_v50 = vunpack.c.l.b16 %v247_v40 }
 0x1a8   :  { %v206_v37 = vpop.f32.mrf.mxu0  ;;  %v245_v43 = vmul.f32 0.25, %v210_v36  ;;  %v253_v48 = vpack.c.bf16 %v210_v36, %v210_v36 }
 0x1a9   :  { %v207_v39 = vadd.f32 %v206_v37, %v176_v30 }
 0x1aa   :  { %v249_v53 = vpack.c.bf16 %v245_v43, %v245_v43  ;;  %v295_v57 = vunpack.c.l.b16 %v253_v48 }
 0x1ab   :  { %v244_v41 = vmul.f32 0.25, %v207_v39  ;;  %v252_v42 = vpack.c.bf16 %v207_v39, %v207_v39 }
 0x1ac   :  { %v290_v60 = vunpack.c.l.b16 %v249_v53 }
 0x1ad   :  { %v248_v45 = vpack.c.bf16 %v244_v41, %v244_v41  ;;  %v263_v46 = vunpack.c.l.b16 %v252_v42  ;;  %v211_v47 = vpop.f32.mrf.mxu2 }
 0x1ae   :  { %v212_v49 = vadd.f32 %v211_v47, %v176_v30 }
 0x1af   :  { %v258_v51 = vunpack.c.l.b16 %v248_v45  ;;  %v1381_v52 = vpack.c.b16 %v263_v46, %v262_v44 }
 0x1b0   :  { %v246_v54 = vmul.f32 0.25, %v212_v49  ;;  %v254_v55 = vpack.c.bf16 %v212_v49, %v212_v49 }
 0x1b1   :  { %265 = vrot.lane.b32.xlu2 %v1381_v52, %s1250_s2  ;;  %v1384_v56 = vpack.c.b16 %v258_v51, %v257_v50 }
 0x1b2   :  { %v250_v58 = vpack.c.bf16 %v246_v54, %v246_v54  ;;  %v296_v59 = vunpack.c.l.b16 %v254_v55 }
 0x1b4   :  { %v291_v61 = vunpack.c.l.b16 %v250_v58  ;;  %v1386_v62 = vpack.c.b16 %v296_v59, %v295_v57 }
 0x1b6   :  { %v1388_v63 = vpack.c.b16 %v291_v61, %v290_v60  ;;  %298 = vrot.lane.b32.xlu0 %v1386_v62, %s1250_s2 }
 0x20b   :  { %v266_v0 = vpop.permute.xlu2 %265 }
 0x20c   :  { %v272_v1 = vsel %vm267_vm14, %v266_v0, 0 }
 0x20d   :  { %281 = vmatpush.bf16.xpose.msra.mxu1 %v272_v1 }
 0x214   :  { %1019 = vmatmul.msk.bf16.vlgmr.msra.gmra.mxu1 %vm267_vm14, %v1384_v56 }
 0x228   :  { %v299_v2 = vpop.permute.xlu0 %298 }
 0x229   :  { %v304_v3 = vsel %vm267_vm14, %v299_v2, 0 }
 0x22a   :  { %313 = vmatpush.bf16.xpose.msrb.mxu2 %v304_v3 }
 0x231   :  { %1020 = vmatmul.msk.bf16.vlgmr.msrb.gmra.mxu2 %vm267_vm14, %v1388_v63 }
 0x291   :  { %v283_v15 = vpop.f32.mrf.mxu1 }
 0x292   :  { %v320_v16 = vsel %vm1398_vm3, %v283_v15, -1e+30 }
 0x293   :  { %v324_v17 = vsel %vm267_vm14, %v320_v16, -inf }
 0x294   :  { %325 = vmax.xlane.f32.xlu1 %v324_v17 }
 0x299   :  { %v285_v21 = vpop.f32.mrf.mxu1 }
 0x29a   :  { %v321_v22 = vsel %vm1406_vm5, %v285_v21, -1e+30 }
 0x29b   :  { %v327_v19 = vsel %vm267_vm14, %v321_v22, -inf }
 0x29c   :  { %328 = vmax.xlane.f32.xlu1 %v327_v19 }
 0x2b4   :  { %v315_v31 = vpop.f32.mrf.mxu2 }
 0x2b5   :  { %v322_v30 = vsel %vm1414_vm8, %v315_v31, -1e+30 }
 0x2b6   :  { %v330_v32 = vsel %vm267_vm14, %v322_v30, -inf }
 0x2b7   :  { %331 = vmax.xlane.f32.xlu1 %v330_v32 }
 0x2bc   :  { %v317_v34 = vpop.f32.mrf.mxu2 }
 0x2bd   :  { %v323_v35 = vsel %vm1422_vm9, %v317_v34, -1e+30 }
 0x2be   :  { %v333_v36 = vsel %vm267_vm14, %v323_v35, -inf }
 0x2bf   :  { %334 = vmax.xlane.f32.xlu2 %v333_v36 }
 0x2d7   :  { %462 = vrot.lane.b32.xlu2 %v1381_v52, %s1252_s22 }
 0x307   :  { %v326_v37 = vpop.xlane.xlu1 %325 }
 0x308   :  { %v336_v38 = vsub.f32 %v320_v16, %v326_v37 }
 0x30a   :  { %v340_v39 = vmul.f32 1.442695, %v336_v38 }
 0x30c   :  { %1119 = vpow2.f32 %v340_v39 }
 0x30f   :  { %v329_v40 = vpop.xlane.xlu1 %328 }
 0x310   :  { %v337_v41 = vsub.f32 %v321_v22, %v329_v40 }
 0x312   :  { %v1120_v42 = vpop.eup %1119  ;;  %v342_v43 = vmul.f32 1.442695, %v337_v41 }
 0x313   :  { %v348_v44 = vsel %vm267_vm14, %v1120_v42, 0.0 }
 0x314   :  { %1121 = vpow2.f32 %v342_v43  ;;  %349 = vadd.xlane.f32.xlu0 %v348_v44 }
 0x31a   :  { %v1122_v45 = vpop.eup %1121 }
 0x31b   :  { %v351_v46 = vsel %vm267_vm14, %v1122_v45, 0.0 }
 0x31c   :  { %352 = vadd.xlane.f32.xlu1 %v351_v46 }
 0x328   :  { %402 = vrot.lane.b32.xlu0 %v1386_v62, %s1253_s23 }
 0x32a   :  { %v332_v55 = vpop.xlane.xlu1 %331 }
 0x32b   :  { %v338_v57 = vsub.f32 %v322_v30, %v332_v55 }
 0x32d   :  { %v344_v58 = vmul.f32 1.442695, %v338_v57 }
 0x330   :  { %460 = vrot.lane.b32.xlu0 %v1384_v56, %s1254_s24 }
 0x332   :  { %v335_v47 = vpop.xlane.xlu2 %334 }
 0x333   :  { %v339_v48 = vsub.f32 %v323_v35, %v335_v47  ;;  %v1083_v35 = vld [vmem:[%s1590_s3] sm:$0xff] }
 0x334   :  { %443 = vmatpush.bf16.msrb.mxu1 %v1083_v35 }
 0x335   :  { %v346_v49 = vmul.f32 1.442695, %v339_v48  ;;  %377 = vrot.lane.b32.xlu1 %v1381_v52, %s1253_s23 }
 0x337   :  { %1123 = vpow2.f32 %v346_v49 }
 0x338   :  { %484 = vrot.lane.b32.xlu0 %v1388_v63, %s1254_s24  ;;  %1125 = vpow2.f32 %v344_v58 }
 0x33a   :  { %v463_v50 = vpop.permute.xlu2 %462 }
 0x33b   :  { %v468_v51 = vsel %vm267_vm14, %v463_v50, 0 }
 0x33c   :  { %477 = vmatpush.bf16.xpose.msra.mxu2 %v468_v51 }
 0x33d   :  { %v1124_v53 = vpop.eup %1123 }
 0x33e   :  { %v357_v54 = vsel %vm267_vm14, %v1124_v53, 0.0  ;;  %v1126_v56 = vpop.eup %1125 }
 0x33f   :  { %358 = vadd.xlane.f32.xlu2 %v357_v54  ;;  %v354_v59 = vsel %vm267_vm14, %v1126_v56, 0.0 }
 0x357   :  { %486 = vrot.lane.b32.xlu2 %v1386_v62, %s1252_s22 }
 0x35f   :  { %355 = vadd.xlane.f32.xlu1 %v354_v59 }
 0x387   :  { %v350_v61 = vpop.xlane.xlu0 %349 }
 0x38f   :  { %v353_v60 = vpop.xlane.xlu1 %352 }
 0x390   :  { %1127 = vrcp.f32 %v353_v60 }
 0x391   :  { %1129 = vrcp.f32 %v350_v61 }
 0x396   :  { %v1128_v63 = vpop.eup %1127 }
 0x397   :  { %v1130_v1 = vpop.eup %1129  ;;  %v365_v2 = vmul.f32 %v1128_v63, %v1122_v45 }
 0x398   :  { %v364_v3 = vmul.f32 %v1130_v1, %v1120_v42 }
 0x399   :  { %v369_v4 = vpack.c.bf16 %v365_v2, %v365_v2 }
 0x39a   :  { %v403_v0 = vpop.permute.xlu0 %402  ;;  %v368_v7 = vpack.c.bf16 %v364_v3, %v364_v3 }
 0x39b   :  { %v375_v8 = vunpack.c.l.b16 %v369_v4 }
 0x39c   :  { %v374_v10 = vunpack.c.l.b16 %v368_v7 }
 0x39e   :  { %v376_v11 = vpack.c.b16 %v375_v8, %v374_v10 }
 0x3a2   :  { %v461_v6 = vpop.permute.xlu0 %460 }
 0x3a3   :  { %1029 = vmatmul.msk.bf16.vlgmr.msra.gmra.mxu2 %vm267_vm14, %v461_v6 }
 0x3a7   :  { %v378_v9 = vpop.permute.xlu1 %377 }
 0x3a8   :  { %390 = vmatpush.bf16.msra.mxu3 %v378_v9 }
 0x3aa   :  { %v485_v34 = vpop.permute.xlu0 %484 }
 0x3ab   :  { %1021 = vmatmul.msk.bf16.vlgmr.msra.gmra.mxu3 %vm267_vm14, %v376_v11 }
 0x3ac   :  { %415 = vmatpush.bf16.msrb.mxu3 %v403_v0 }
 0x3b2   :  { %v359_v13 = vpop.xlane.xlu2 %358 }
 0x3b3   :  { %1131 = vrcp.f32 %v359_v13 }
 0x3b9   :  { %v1132_v21 = vpop.eup %1131 }
 0x3ba   :  { %v487_v15 = vpop.permute.xlu2 %486  ;;  %v367_v22 = vmul.f32 %v1132_v21, %v1124_v53 }
 0x3bb   :  { %v492_v16 = vsel %vm267_vm14, %v487_v15, 0 }
 0x3bc   :  { %501 = vmatpush.bf16.xpose.msra.mxu3 %v492_v16  ;;  %v371_v23 = vpack.c.bf16 %v367_v22, %v367_v22 }
 0x3be   :  { %v400_v31 = vunpack.c.l.b16 %v371_v23 }
 0x3d2   :  { %v356_v17 = vpop.xlane.xlu1 %355 }
 0x3d3   :  { %1133 = vrcp.f32 %v356_v17 }
 0x3d9   :  { %v1134_v19 = vpop.eup %1133 }
 0x3da   :  { %v366_v24 = vmul.f32 %v1134_v19, %v1126_v56 }
 0x3dc   :  { %v370_v25 = vpack.c.bf16 %v366_v24, %v366_v24 }
 0x3de   :  { %v399_v30 = vunpack.c.l.b16 %v370_v25 }
 0x3e0   :  { %v401_v32 = vpack.c.b16 %v400_v31, %v399_v30 }
 0x3e2   :  { %1022 = vmatmul.msk.bf16.vlgmr.msrb.gmra.mxu3 %vm267_vm14, %v401_v32 }
 0x3f2   :  { %1030 = vmatmul.msk.bf16.vlgmr.msra.gmra.mxu3 %vm267_vm14, %v485_v34 }
 0x426   :  { %v479_v36 = vpop.f32.mrf.mxu2 }
 0x427   :  { %v508_v37 = vsel %vm1398_vm3, %v479_v36, -1e+30 }
 0x428   :  { %v512_v38 = vsel %vm267_vm14, %v508_v37, -inf }
 0x429   :  { %513 = vmax.xlane.f32.xlu2 %v512_v38 }
 0x42e   :  { %v392_v39 = vpop.f32.mrf.mxu3  ;;  %v481_v40 = vpop.f32.mrf.mxu2 }
 0x42f   :  { %v509_v41 = vsel %vm1406_vm5, %v481_v40, -1e+30  ;;  %v1084_v40 = vld [vmem:[%s1590_s3 + $0x8] sm:$0xff] }
 0x430   :  { %v515_v42 = vsel %vm267_vm14, %v509_v41, -inf  ;;  %631 = vmatpush.bf16.msrb.mxu3 %v1084_v40 }
 0x431   :  { %516 = vmax.xlane.f32.xlu0 %v515_v42 }
 0x436   :  { %v394_v43 = vpop.f32.mrf.mxu3 }
 0x437   :  { %v422_v44 = vpack.c.bf16 %v394_v43, %v392_v39 }
 0x439   :  { %1027 = vmatmul.msk.bf16.vlgmr.msrb.gmra.mxu1 %vm267_vm14, %v422_v44 }
 0x445   :  { %590 = vrot.lane.b32.xlu0 %v1386_v62, %s1255_s27 }
 0x465   :  { %v417_v12 = vpop.f32.mrf.mxu3 }
 0x46d   :  { %v419_v45 = vpop.f32.mrf.mxu3 }
 0x46e   :  { %v423_v46 = vpack.c.bf16 %v419_v45, %v417_v12 }
 0x470   :  { %1028 = vmatmul.msk.bf16.gmra.mxu1 %vm267_vm14, %v423_v46 }
 0x475   :  { %v503_v50 = vpop.f32.mrf.mxu3 }
 0x476   :  { %v510_v54 = vsel %vm1414_vm8, %v503_v50, -1e+30 }
 0x477   :  { %v518_v62 = vsel %vm267_vm14, %v510_v54, -inf }
 0x47d   :  { %v505_v57 = vpop.f32.mrf.mxu3 }
 0x47e   :  { %v511_v56 = vsel %vm1422_vm9, %v505_v57, -1e+30 }
 0x47f   :  { %v521_v60 = vsel %vm267_vm14, %v511_v56, -inf }
 0x49c   :  { %v514_v47 = vpop.xlane.xlu2 %513 }
 0x49d   :  { %v524_v48 = vsub.f32 %v508_v37, %v514_v47  ;;  %v455_v47 = vperm.slane %v1358_v5, 3 }
 0x49f   :  { %v528_v18 = vmul.f32 1.442695, %v524_v48 }
 0x4a1   :  { %1135 = vpow2.f32 %v528_v18 }
 0x4a4   :  { %v517_v53 = vpop.xlane.xlu0 %516 }
 0x4a5   :  { %v525_v55 = vsub.f32 %v509_v41, %v517_v53 }
 0x4a7   :  { %v1136_v49 = vpop.eup %1135  ;;  %v530_v58 = vmul.f32 1.442695, %v525_v55 }
 0x4a8   :  { %v536_v51 = vsel %vm267_vm14, %v1136_v49, 0.0 }
 0x4a9   :  { %537 = vadd.xlane.f32.xlu1 %v536_v51  ;;  %1137 = vpow2.f32 %v530_v58 }
 0x4af   :  { %v1138_v61 = vpop.eup %1137 }
 0x4b0   :  { %v539_v63 = vsel %vm267_vm14, %v1138_v61, 0.0 }
 0x4b1   :  { %519 = vmax.xlane.f32.xlu1 %v518_v62 }
 0x4b6   :  { %v445_v46 = vpop.f32.mrf.mxu1 }
 0x4b7   :  { %v591_v59 = vpop.permute.xlu0 %590  ;;  %v456_v48 = vadd.f32 %v455_v47, %v445_v46 }
 0x4b8   :  { %603 = vmatpush.bf16.msrb.mxu2 %v591_v59 }
 0x4b9   :  { %522 = vmax.xlane.f32.xlu1 %v521_v60 }
 0x4be   :  { %v447_v50 = vpop.f32.mrf.mxu1 }
 0x4c1   :  { %540 = vadd.xlane.f32.xlu1 %v539_v63 }
 0x4ed   :  { %v450_v57 = vpop.f32.mrf.mxu1 }
 0x4ee   :  { %v458_v59 = vadd.f32 %v455_v47, %v450_v57  ;;  %v739_v57 = vperm.slane %v1358_v5, 4 }
 0x51c   :  { %v538_v29 = vpop.xlane.xlu1 %537 }
 0x524   :  { %v520_v0 = vpop.xlane.xlu1 %519 }
 0x525   :  { %v526_v1 = vsub.f32 %v510_v54, %v520_v0  ;;  %v457_v54 = vadd.f32 %v455_v47, %v447_v50 }
 0x527   :  { %v532_v2 = vmul.f32 1.442695, %v526_v1 }
 0x529   :  { %1139 = vpow2.f32 %v532_v2 }
 0x52c   :  { %v523_v3 = vpop.xlane.xlu1 %522 }
 0x52d   :  { %v527_v4 = vsub.f32 %v511_v56, %v523_v3 }
 0x52f   :  { %v1140_v6 = vpop.eup %1139  ;;  %v534_v33 = vmul.f32 1.442695, %v527_v4 }
 0x530   :  { %v542_v7 = vsel %vm267_vm14, %v1140_v6, 0.0 }
 0x531   :  { %1141 = vpow2.f32 %v534_v33  ;;  %543 = vadd.xlane.f32.xlu1 %v542_v7 }
 0x534   :  { %v541_v10 = vpop.xlane.xlu1 %540 }
 0x537   :  { %v1142_v8 = vpop.eup %1141 }
 0x538   :  { %v545_v9 = vsel %vm267_vm14, %v1142_v8, 0.0 }
 0x539   :  { %546 = vadd.xlane.f32.xlu2 %v545_v9 }
 0x54a   :  { %565 = vrot.lane.b32.xlu1 %v1381_v52, %s1255_s27 }
 0x5a4   :  { %v544_v11 = vpop.xlane.xlu1 %543 }
 0x5a5   :  { %1143 = vrcp.f32 %v544_v11 }
 0x5a6   :  { %1145 = vrcp.f32 %v541_v10 }
 0x5a7   :  { %1147 = vrcp.f32 %v538_v29  ;;  %v452_v29 = vpop.f32.mrf.mxu1 }
 0x5a8   :  { %v459_v0 = vadd.f32 %v455_v47, %v452_v29 }
 0x5ab   :  { %v1144_v15 = vpop.eup %1143 }
 0x5ac   :  { %v547_v13 = vpop.xlane.xlu2 %546  ;;  %v1146_v16 = vpop.eup %1145  ;;  %v554_v17 = vmul.f32 %v1144_v15, %v1140_v6 }
 0x5ad   :  { %1149 = vrcp.f32 %v547_v13  ;;  %v1148_v21 = vpop.eup %1147  ;;  %v553_v22 = vmul.f32 %v1146_v16, %v1138_v61 }
 0x5ae   :  { %v552_v23 = vmul.f32 %v1148_v21, %v1136_v49  ;;  %v558_v24 = vpack.c.bf16 %v554_v17, %v554_v17 }
 0x5af   :  { %v557_v31 = vpack.c.bf16 %v553_v22, %v553_v22 }
 0x5b0   :  { %v556_v32 = vpack.c.bf16 %v552_v23, %v552_v23  ;;  %v587_v52 = vunpack.c.l.b16 %v558_v24 }
 0x5b1   :  { %v563_v35 = vunpack.c.l.b16 %v557_v31  ;;  %v1086_v31 = vld [vmem:[%s1591_s4 + $0x8] sm:$0xff] }
 0x5b2   :  { %v562_v37 = vunpack.c.l.b16 %v556_v32 }
 0x5b3   :  { %v1150_v19 = vpop.eup %1149 }
 0x5b4   :  { %v555_v25 = vmul.f32 %v1150_v19, %v1142_v8  ;;  %v564_v39 = vpack.c.b16 %v563_v35, %v562_v37 }
 0x5b6   :  { %v559_v30 = vpack.c.bf16 %v555_v25, %v555_v25 }
 0x5b8   :  { %v588_v34 = vunpack.c.l.b16 %v559_v30 }
 0x5ba   :  { %v589_v36 = vpack.c.b16 %v588_v34, %v587_v52  ;;  %v1085_v52 = vld [vmem:[%s1591_s4] sm:$0xff] }
 0x5bc   :  { %1032 = vmatmul.msk.bf16.vlgmr.msrb.gmra.mxu2 %vm267_vm14, %v589_v36  ;;  %v566_v38 = vpop.permute.xlu1 %565 }
 0x5bd   :  { %578 = vmatpush.bf16.msrb.mxu0 %v566_v38 }
 0x5c0   :  { %1031 = vmatmul.msk.bf16.vlgmr.msrb.gmra.mxu0 %vm267_vm14, %v564_v39 }
 0x5c1   :  { %780 = vmatpush.bf16.msra.mxu0 %v1086_v31 }
 0x5c5   :  { %781 = vmatpush.bf16.msra.mxu0 %v1085_v52  ;;  %v1087_v52 = vld [vmem:[%s1592_s5] sm:$0xff] }
 0x63d   :  { %v580_v41 = vpop.f32.mrf.mxu0 }
 0x63f   :  { %v605_v44 = vpop.f32.mrf.mxu2 }
 0x645   :  { %v582_v42 = vpop.f32.mrf.mxu0 }
 0x646   :  { %v610_v43 = vpack.c.bf16 %v582_v42, %v580_v41 }
 0x647   :  { %v607_v12 = vpop.f32.mrf.mxu2 }
 0x648   :  { %1037 = vmatmul.msk.bf16.vlgmr.msrb.gmra.mxu3 %vm267_vm14, %v610_v43  ;;  %v611_v45 = vpack.c.bf16 %v607_v12, %v605_v44 }
 0x658   :  { %1038 = vmatmul.msk.bf16.gmra.mxu3 %vm267_vm14, %v611_v45 }
 0x6cb   :  { %v633_v18 = vpop.f32.mrf.mxu3 }
 0x6cc   :  { %v643_v49 = vadd.f32 %v633_v18, %v456_v48  ;;  %v1094_v18 = vld [vmem:[%s1592_s5 + $0x38] sm:$0xff] }
 0x6cd   :  { %864 = vmatpush.bf16.msra.mxu1 %v1094_v18 }
 0x6ce   :  { %v647_v51 = vadd.f32 %v643_v49, %v1370_v20 }
 0x6d0   :  { %v651_v53 = vsel %vm64_vm0, %v647_v51, 0.0 }
 0x6d1   :  { %652 = vadd.xlane.f32.xlu2 %v651_v53 }
 0x6d3   :  { %v635_v55 = vpop.f32.mrf.mxu3 }
 0x6d4   :  { %v644_v62 = vadd.f32 %v635_v55, %v457_v54  ;;  %v1093_v54 = vld [vmem:[%s1592_s5 + $0x30] sm:$0xff] }
 0x6d5   :  { %865 = vmatpush.bf16.msra.mxu1 %v1093_v54 }
 0x6d6   :  { %v648_v58 = vadd.f32 %v644_v62, %v1372_v28 }
 0x6d8   :  { %v654_v56 = vsel %vm64_vm0, %v648_v58, 0.0 }
 0x6d9   :  { %655 = vadd.xlane.f32.xlu2 %v654_v56 }
 0x6db   :  { %v638_v60 = vpop.f32.mrf.mxu3 }
 0x6dc   :  { %v645_v61 = vadd.f32 %v638_v60, %v458_v59 }
 0x6de   :  { %v649_v63 = vadd.f32 %v645_v61, %v1366_v26  ;;  %v1092_v61 = vld [vmem:[%s1592_s5 + $0x28] sm:$0xff] }
 0x6df   :  { %866 = vmatpush.bf16.msra.mxu1 %v1092_v61 }
 0x6e0   :  { %v657_v20 = vsel %vm64_vm0, %v649_v63, 0.0 }
 0x6e1   :  { %658 = vadd.xlane.f32.xlu0 %v657_v20  ;;  %v744_v20 = vperm.slane %v1358_v5, 5 }
 0x6e3   :  { %v640_v1 = vpop.f32.mrf.mxu3 }
 0x6e4   :  { %v646_v2 = vadd.f32 %v640_v1, %v459_v0 }
 0x6e6   :  { %v650_v3 = vadd.f32 %v646_v2, %v1368_v27 }
 0x6e8   :  { %v660_v4 = vsel %vm64_vm0, %v650_v3, 0.0 }
 0x6e9   :  { %661 = vadd.xlane.f32.xlu2 %v660_v4  ;;  %v1091_v4 = vld [vmem:[%s1592_s5 + $0x20] sm:$0xff] }
 0x6ea   :  { %867 = vmatpush.bf16.msra.mxu1 %v1091_v4 }
 0x744   :  { %v653_v28 = vpop.xlane.xlu2 %652 }
 0x745   :  { %v663_v6 = vmul.f32 %v653_v28, %v1322_v14 }
 0x747   :  { %v667_v33 = vsub.f32 %v647_v51, %v663_v6 }
 0x749   :  { %v671_v7 = vmul.f32 %v667_v33, %v667_v33 }
 0x74b   :  { %v675_v8 = vsel %vm64_vm0, %v671_v7, 0.0 }
 0x74c   :  { %676 = vadd.xlane.f32.xlu1 %v675_v8  ;;  %v656_v26 = vpop.xlane.xlu2 %655 }
 0x74d   :  { %v664_v9 = vmul.f32 %v656_v26, %v1322_v14 }
 0x74f   :  { %v1491_v10 = vsub.f32 %v648_v58, %v664_v9 }
 0x751   :  { %v672_v11 = vmul.f32 %v1491_v10, %v1491_v10 }
 0x753   :  { %v678_v27 = vsel %vm64_vm0, %v672_v11, 0.0 }
 0x754   :  { %v659_v13 = vpop.xlane.xlu0 %658  ;;  %679 = vadd.xlane.f32.xlu2 %v678_v27 }
 0x755   :  { %v665_v15 = vmul.f32 %v659_v13, %v1322_v14 }
 0x757   :  { %v1497_v16 = vsub.f32 %v649_v63, %v665_v15 }
 0x759   :  { %v673_v17 = vmul.f32 %v1497_v16, %v1497_v16 }
 0x75b   :  { %v681_v21 = vsel %vm64_vm0, %v673_v17, 0.0 }
 0x75c   :  { %682 = vadd.xlane.f32.xlu2 %v681_v21  ;;  %v662_v22 = vpop.xlane.xlu2 %661 }
 0x75d   :  { %v666_v19 = vmul.f32 %v662_v22, %v1322_v14 }
 0x75f   :  { %v1503_v23 = vsub.f32 %v650_v3, %v666_v19 }
 0x761   :  { %v674_v24 = vmul.f32 %v1503_v23, %v1503_v23 }
 0x763   :  { %v684_v25 = vsel %vm64_vm0, %v674_v24, 0.0 }
 0x764   :  { %685 = vadd.xlane.f32.xlu2 %v684_v25 }
 0x7bf   :  { %v677_v30 = vpop.xlane.xlu1 %676 }
 0x7c0   :  { %v687_v32 = vmul.f32 %v677_v30, %v1322_v14 }
 0x7c2   :  { %v691_v34 = vadd.f32 1e-05, %v687_v32  ;;  %v1090_v32 = vld [vmem:[%s1592_s5 + $0x18] sm:$0xff] }
 0x7c3   :  { %868 = vmatpush.bf16.msra.mxu1 %v1090_v32 }
 0x7c4   :  { %1151 = vrsqrt.f32 %v691_v34  ;;  %vm701_vm11 = vweird.f32 %v691_v34 }
 0x7c7   :  { %v680_v35 = vpop.xlane.xlu2 %679 }
 0x7c8   :  { %v688_v36 = vmul.f32 %v680_v35, %v1322_v14  ;;  %v755_v35 = vperm.slane %v1358_v5, 6 }
 0x7ca   :  { %v1152_v37 = vpop.eup %1151  ;;  %v692_v38 = vadd.f32 1e-05, %v688_v36 }
 0x7cb   :  { %v696_v39 = vmul.f32 %v1152_v37, %v691_v34  ;;  %vm702_vm10 = vweird.f32 %v1152_v37 }
 0x7cc   :  { %1153 = vrsqrt.f32 %v692_v38  ;;  %vm703_vm12 = vmor %vm701_vm11, %vm702_vm10  ;;  %vm711_vm14 = vweird.f32 %v692_v38 }
 0x7cd   :  { %v697_v40 = vmul.f32 %v1152_v37, %v696_v39 }
 0x7cf   :  { %v698_v41 = vmul.f32 0.5, %v697_v40  ;;  %v683_v42 = vpop.xlane.xlu2 %682 }
 0x7d0   :  { %v689_v43 = vmul.f32 %v683_v42, %v1322_v14 }
 0x7d1   :  { %v699_v44 = vsub.f32 1.5, %v698_v41 }
 0x7d2   :  { %v1154_v12 = vpop.eup %1153  ;;  %v693_v45 = vadd.f32 1e-05, %v689_v43 }
 0x7d3   :  { %v700_v46 = vmul.f32 %v1152_v37, %v699_v44  ;;  %v706_v47 = vmul.f32 %v1154_v12, %v692_v38  ;;  %vm712_vm13 = vweird.f32 %v1154_v12 }
 0x7d4   :  { %1155 = vrsqrt.f32 %v693_v45  ;;  %vm713_vm15 = vmor %vm711_vm14, %vm712_vm13  ;;  %vm721_vm2 = vweird.f32 %v693_v45 }
 0x7d5   :  { %v707_v48 = vmul.f32 %v1154_v12, %v706_v47  ;;  %v704_v49 = vsel %vm703_vm12, %v1152_v37, %v700_v46 }
 0x7d6   :  { %v735_v58 = vmul.f32 %v704_v49, %v667_v33 }
 0x7d7   :  { %v708_v50 = vmul.f32 0.5, %v707_v48  ;;  %v686_v51 = vpop.xlane.xlu2 %685  ;;  %v815_v48 = vperm.slane %v1358_v5, 7 }
 0x7d8   :  { %v690_v53 = vmul.f32 %v686_v51, %v1322_v14  ;;  %v740_v0 = vmul.f32 %v739_v57, %v735_v58 }
 0x7d9   :  { %v709_v55 = vsub.f32 1.5, %v708_v50 }
 0x7da   :  { %v1156_v62 = vpop.eup %1155  ;;  %v694_v56 = vadd.f32 1e-05, %v690_v53  ;;  %v745_v33 = vadd.f32 %v744_v20, %v740_v0 }
 0x7db   :  { %v710_v59 = vmul.f32 %v1154_v12, %v709_v55  ;;  %v716_v60 = vmul.f32 %v1156_v62, %v693_v45  ;;  %vm722_vm1 = vweird.f32 %v1156_v62 }
 0x7dc   :  { %1157 = vrsqrt.f32 %v694_v56  ;;  %vm723_vm3 = vmor %vm721_vm2, %vm722_vm1  ;;  %vm731_vm5 = vweird.f32 %v694_v56 }
 0x7dd   :  { %v714_v63 = vsel %vm713_vm15, %v1154_v12, %v710_v59  ;;  %v717_v29 = vmul.f32 %v1156_v62, %v716_v60 }
 0x7de   :  { %v736_v1 = vmul.f32 %v714_v63, %v1491_v10 }
 0x7df   :  { %v718_v2 = vmul.f32 0.5, %v717_v29 }
 0x7e0   :  { %v741_v3 = vmul.f32 %v739_v57, %v736_v1 }
 0x7e1   :  { %v719_v28 = vsub.f32 1.5, %v718_v2 }
 0x7e2   :  { %v1158_v6 = vpop.eup %1157  ;;  %v746_v7 = vadd.f32 %v744_v20, %v741_v3 }
 0x7e3   :  { %v720_v8 = vmul.f32 %v1156_v62, %v719_v28  ;;  %v726_v26 = vmul.f32 %v1158_v6, %v694_v56  ;;  %vm732_vm4 = vweird.f32 %v1158_v6 }
 0x7e4   :  { %v749_v9 = vpack.c.bf16 %v746_v7, %v745_v33  ;;  %vm733_vm6 = vmor %vm731_vm5, %vm732_vm4 }
 0x7e5   :  { %v727_v11 = vmul.f32 %v1158_v6, %v726_v26  ;;  %v724_v10 = vsel %vm723_vm3, %v1156_v62, %v720_v8 }
 0x7e6   :  { %1047 = vmatmul.msk.bf16.vlgmr.msra.gmra.mxu0 %vm64_vm0, %v749_v9  ;;  %v737_v15 = vmul.f32 %v724_v10, %v1497_v16  ;;  %v1089_v16 = vld [vmem:[%s1592_s5 + $0x10] sm:$0xff] }
 0x7e7   :  { %v728_v27 = vmul.f32 0.5, %v727_v11  ;;  %869 = vmatpush.bf16.msra.mxu1 %v1089_v16 }
 0x7e8   :  { %v742_v19 = vmul.f32 %v739_v57, %v737_v15 }
 0x7e9   :  { %v729_v13 = vsub.f32 1.5, %v728_v27 }
 0x7ea   :  { %v747_v25 = vadd.f32 %v744_v20, %v742_v19 }
 0x7eb   :  { %v730_v17 = vmul.f32 %v1158_v6, %v729_v13 }
 0x7ed   :  { %v734_v21 = vsel %vm733_vm6, %v1158_v6, %v730_v17 }
 0x7ee   :  { %v738_v22 = vmul.f32 %v734_v21, %v1503_v23  ;;  %v1088_v23 = vld [vmem:[%s1592_s5 + $0x8] sm:$0xff]  ;;  %s1256_s5 = smov [#allocation7]  }
 0x7ef   :  { %870 = vmatpush.bf16.msra.mxu1 %v1088_v23  ;;  %s993_s23 = sshll.u32 %s1256_s5, 4  ;;  %s994_s23 = int_to_ptr.vmem [resolvable:$true] %s993_s23 }
 0x7f0   :  { %v743_v24 = vmul.f32 %v739_v57, %v738_v22 }
 0x7f2   :  { %v748_v31 = vadd.f32 %v744_v20, %v743_v24 }
 0x7f3   :  { %871 = vmatpush.bf16.msra.mxu1 %v1087_v52 }
 0x7f4   :  { %v750_v30 = vpack.c.bf16 %v748_v31, %v747_v25 }
 0x7f6   :  { %1048 = vmatmul.msk.bf16.gmra.mxu0 %vm64_vm0, %v750_v30 }
 0x863   :  { %v783_v34 = vpop.f32.mrf.mxu0 }
 0x864   :  { %v784_v36 = vadd.f32 %v783_v34, %v755_v35 }
 0x866   :  { %v793_v39 = vmax.f32 %v784_v36, 0.0 }
 0x86b   :  { %v785_v37 = vpop.f32.mrf.mxu0 }
 0x86c   :  { %v786_v38 = vadd.f32 %v785_v37, %v755_v35 }
 0x86e   :  { %v794_v40 = vmax.f32 %v786_v38, 0.0 }
 0x870   :  { %v797_v41 = vpack.c.bf16 %v794_v40, %v793_v39 }
 0x872   :  { %872 = vmatmul.bf16.vlgmr.msra.gmra.mxu1 %v797_v41 }
 0x873   :  { %v788_v42 = vpop.f32.mrf.mxu0 }
 0x874   :  { %v789_v43 = vadd.f32 %v788_v42, %v755_v35 }
 0x876   :  { %v795_v45 = vmax.f32 %v789_v43, 0.0 }
 0x87b   :  { %v790_v44 = vpop.f32.mrf.mxu0 }
 0x87c   :  { %v791_v12 = vadd.f32 %v790_v44, %v755_v35  ;;  %v59_v35 = vld [vmem:[#allocation5 + $0x8] sm:$0x3] }
 0x87d   :  { %v975_v41 = vperm.slane %v59_v35, 0  ;;  %v980_v44 = vperm.slane %v59_v35, 1 }
 0x87e   :  { %v796_v46 = vmax.f32 %v791_v12, 0.0 }
 0x880   :  { %v798_v47 = vpack.c.bf16 %v796_v46, %v795_v45 }
 0x882   :  { %877 = vmatmul.bf16.gmra.mxu1 %v798_v47 }
 0x8ef   :  { %v873_v18 = vpop.f32.mrf.mxu1 }
 0x8f0   :  { %v874_v49 = vadd.f32 %v873_v18, %v815_v48 }
 0x8f2   :  { %v883_v50 = vadd.f32 %v874_v49, %v745_v33 }
 0x8f4   :  { %v887_v51 = vsel %vm64_vm0, %v883_v50, 0.0 }
 0x8f5   :  { %888 = vadd.xlane.f32.xlu2 %v887_v51 }
 0x8f7   :  { %v875_v53 = vpop.f32.mrf.mxu1 }
 0x8f8   :  { %v876_v54 = vadd.f32 %v875_v53, %v815_v48 }
 0x8fa   :  { %v884_v55 = vadd.f32 %v876_v54, %v746_v7 }
 0x8fc   :  { %v890_v62 = vsel %vm64_vm0, %v884_v55, 0.0 }
 0x8fd   :  { %891 = vadd.xlane.f32.xlu0 %v890_v62 }
 0x8ff   :  { %v878_v57 = vpop.f32.mrf.mxu1 }
 0x900   :  { %v879_v58 = vadd.f32 %v878_v57, %v815_v48 }
 0x902   :  { %v885_v56 = vadd.f32 %v879_v58, %v747_v25 }
 0x904   :  { %v893_v59 = vsel %vm64_vm0, %v885_v56, 0.0 }
 0x905   :  { %894 = vadd.xlane.f32.xlu2 %v893_v59 }
 0x907   :  { %v880_v60 = vpop.f32.mrf.mxu1 }
 0x908   :  { %v881_v5 = vadd.f32 %v880_v60, %v815_v48 }
 0x90a   :  { %v886_v61 = vadd.f32 %v881_v5, %v748_v31 }
 0x90c   :  { %v896_v63 = vsel %vm64_vm0, %v886_v61, 0.0 }
 0x90d   :  { %897 = vadd.xlane.f32.xlu1 %v896_v63 }
 0x968   :  { %v889_v29 = vpop.xlane.xlu2 %888 }
 0x969   :  { %v899_v20 = vmul.f32 %v889_v29, %v1322_v14 }
 0x96b   :  { %v903_v0 = vsub.f32 %v883_v50, %v899_v20 }
 0x96d   :  { %v907_v1 = vmul.f32 %v903_v0, %v903_v0 }
 0x96f   :  { %v911_v2 = vsel %vm64_vm0, %v907_v1, 0.0 }
 0x970   :  { %v892_v3 = vpop.xlane.xlu0 %891  ;;  %912 = vadd.xlane.f32.xlu0 %v911_v2 }
 0x971   :  { %v900_v4 = vmul.f32 %v892_v3, %v1322_v14 }
 0x973   :  { %v904_v28 = vsub.f32 %v884_v55, %v900_v4 }
 0x975   :  { %v908_v6 = vmul.f32 %v904_v28, %v904_v28 }
 0x977   :  { %v914_v33 = vsel %vm64_vm0, %v908_v6, 0.0 }
 0x978   :  { %915 = vadd.xlane.f32.xlu2 %v914_v33  ;;  %v895_v7 = vpop.xlane.xlu2 %894 }
 0x979   :  { %v901_v8 = vmul.f32 %v895_v7, %v1322_v14 }
 0x97b   :  { %v1560_v26 = vsub.f32 %v885_v56, %v901_v8 }
 0x97d   :  { %v909_v9 = vmul.f32 %v1560_v26, %v1560_v26 }
 0x97f   :  { %v917_v11 = vsel %vm64_vm0, %v909_v9, 0.0 }
 0x980   :  { %v898_v10 = vpop.xlane.xlu1 %897  ;;  %918 = vadd.xlane.f32.xlu1 %v917_v11 }
 0x981   :  { %v902_v27 = vmul.f32 %v898_v10, %v1322_v14 }
 0x983   :  { %v1566_v13 = vsub.f32 %v886_v61, %v902_v27 }
 0x985   :  { %v910_v15 = vmul.f32 %v1566_v13, %v1566_v13 }
 0x987   :  { %v920_v17 = vsel %vm64_vm0, %v910_v15, 0.0 }
 0x988   :  { %921 = vadd.xlane.f32.xlu0 %v920_v17 }
 0x9e3   :  { %v913_v21 = vpop.xlane.xlu0 %912 }
 0x9e4   :  { %v923_v22 = vmul.f32 %v913_v21, %v1322_v14 }
 0x9e6   :  { %v927_v19 = vadd.f32 1e-05, %v923_v22 }
 0x9e8   :  { %1159 = vrsqrt.f32 %v927_v19  ;;  %vm937_vm8 = vweird.f32 %v927_v19 }
 0x9eb   :  { %v916_v24 = vpop.xlane.xlu2 %915 }
 0x9ec   :  { %v924_v25 = vmul.f32 %v916_v24, %v1322_v14 }
 0x9ee   :  { %v1160_v31 = vpop.eup %1159  ;;  %v928_v30 = vadd.f32 1e-05, %v924_v25 }
 0x9ef   :  { %v932_v32 = vmul.f32 %v1160_v31, %v927_v19  ;;  %vm938_vm7 = vweird.f32 %v1160_v31 }
 0x9f0   :  { %1161 = vrsqrt.f32 %v928_v30  ;;  %vm939_vm9 = vmor %vm937_vm8, %vm938_vm7  ;;  %vm947_vm11 = vweird.f32 %v928_v30 }
 0x9f1   :  { %v933_v16 = vmul.f32 %v1160_v31, %v932_v32 }
 0x9f3   :  { %v934_v23 = vmul.f32 0.5, %v933_v16  ;;  %v919_v52 = vpop.xlane.xlu1 %918 }
 0x9f4   :  { %v925_v34 = vmul.f32 %v919_v52, %v1322_v14 }
 0x9f5   :  { %v935_v36 = vsub.f32 1.5, %v934_v23 }
 0x9f6   :  { %v1162_v37 = vpop.eup %1161  ;;  %v929_v38 = vadd.f32 1e-05, %v925_v34 }
 0x9f7   :  { %v936_v39 = vmul.f32 %v1160_v31, %v935_v36  ;;  %v942_v40 = vmul.f32 %v1162_v37, %v928_v30  ;;  %vm948_vm10 = vweird.f32 %v1162_v37 }
 0x9f8   :  { %1163 = vrsqrt.f32 %v929_v38  ;;  %vm949_vm12 = vmor %vm947_vm11, %vm948_vm10  ;;  %vm957_vm14 = vweird.f32 %v929_v38 }
 0x9f9   :  { %v940_v42 = vsel %vm939_vm9, %v1160_v31, %v936_v39  ;;  %v943_v43 = vmul.f32 %v1162_v37, %v942_v40 }
 0x9fa   :  { %v971_v12 = vmul.f32 %v940_v42, %v903_v0 }
 0x9fb   :  { %v944_v45 = vmul.f32 0.5, %v943_v43  ;;  %v922_v46 = vpop.xlane.xlu0 %921 }
 0x9fc   :  { %v976_v47 = vmul.f32 %v975_v41, %v971_v12  ;;  %v926_v48 = vmul.f32 %v922_v46, %v1322_v14 }
 0x9fd   :  { %v945_v18 = vsub.f32 1.5, %v944_v45 }
 0x9fe   :  { %v1164_v49 = vpop.eup %1163  ;;  %v981_v50 = vadd.f32 %v980_v44, %v976_v47  ;;  %v930_v51 = vadd.f32 1e-05, %v926_v48 }
 0x9ff   :  { %v946_v53 = vmul.f32 %v1162_v37, %v945_v18  ;;  %v952_v54 = vmul.f32 %v1164_v49, %v929_v38  ;;  %vm958_vm13 = vweird.f32 %v1164_v49 }
 0xa00   :  { %985 = vst.msk [vmem:[#allocation7] sm:$0xff] %vm64_vm0, %v981_v50  ;;  %1165 = vrsqrt.f32 %v930_v51  ;;  %vm959_vm15 = vmor %vm957_vm14, %vm958_vm13  ;;  %vm967_vm2 = vweird.f32 %v930_v51 }
 0xa01   :  { %v950_v55 = vsel %vm949_vm12, %v1162_v37, %v946_v53  ;;  %v953_v62 = vmul.f32 %v1164_v49, %v952_v54 }
 0xa02   :  { %v972_v57 = vmul.f32 %v950_v55, %v904_v28 }
 0xa03   :  { %v954_v58 = vmul.f32 0.5, %v953_v62 }
 0xa04   :  { %v977_v56 = vmul.f32 %v975_v41, %v972_v57 }
 0xa05   :  { %v955_v59 = vsub.f32 1.5, %v954_v58 }
 0xa06   :  { %v1166_v14 = vpop.eup %1165  ;;  %v982_v60 = vadd.f32 %v980_v44, %v977_v56 }
 0xa07   :  { %v956_v5 = vmul.f32 %v1164_v49, %v955_v59  ;;  %v962_v61 = vmul.f32 %v1166_v14, %v930_v51  ;;  %vm968_vm1 = vweird.f32 %v1166_v14 }
 0xa08   :  { %986 = vst.msk [vmem:[#allocation7 + $0x8] sm:$0xff] %vm64_vm0, %v982_v60  ;;  %vm969_vm3 = vmor %vm967_vm2, %vm968_vm1 }
 0xa09   :  { %v960_v63 = vsel %vm959_vm15, %v1164_v49, %v956_v5  ;;  %v963_v29 = vmul.f32 %v1166_v14, %v962_v61 }
 0xa0a   :  { %v973_v20 = vmul.f32 %v960_v63, %v1560_v26 }
 0xa0b   :  { %v964_v0 = vmul.f32 0.5, %v963_v29 }
 0xa0c   :  { %v978_v1 = vmul.f32 %v975_v41, %v973_v20 }
 0xa0d   :  { %v965_v2 = vsub.f32 1.5, %v964_v0 }
 0xa0e   :  { %v983_v3 = vadd.f32 %v980_v44, %v978_v1 }
 0xa0f   :  { %v966_v4 = vmul.f32 %v1166_v14, %v965_v2 }
 0xa10   :  { %987 = vst.msk [vmem:[#allocation7 + $0x10] sm:$0xff] %vm64_vm0, %v983_v3 }
 0xa11   :  { %v970_v28 = vsel %vm969_vm3, %v1166_v14, %v966_v4 }
 0xa12   :  { %v974_v6 = vmul.f32 %v970_v28, %v1566_v13 }
 0xa14   :  { %v979_v33 = vmul.f32 %v975_v41, %v974_v6 }
 0xa16   :  { %v984_v7 = vadd.f32 %v980_v44, %v979_v33 }
 0xa18   :  { %988 = vst.msk [vmem:[#allocation7 + $0x18] sm:$0xff] %vm64_vm0, %v984_v7 }
 0xa19   :  { %1001 = dma.vmem_to_hbm [thread:$0]  %s994_s23, 512, %s996_s26, [#allocation4], %s1247_s11, %s1247_s11, %s1248_s12  }
 0xa1a   :  { %1243 = dma.done.wait [#allocation4], 512  }
 0xa1b   :  { %1244 = vsyncadd [#allocation4], 4294966784 }
 0xa1c   :  { %1006 = vsyncpa [#allocation3], 1 }
 0xa1d   :  { %1007 = vsyncpa [#allocation6], 1 }
 0xa1e   :  { %1008 = vsyncpa [#allocation4], 1 }

</bundles_post_ra>
